<compile_context>
chip_gen: v7x
topology: tpu7x:2x2x1
jax: 0.10.0
libtpu: 0.0.40
codegen_flags: <defaults>
</compile_context>

<pallas_src>
import jax
import jax.numpy as jnp
from jax.experimental import pallas as pl
from jax.experimental.pallas import tpu as pltpu


INPUT_SIZE = 32
HIDDEN_SIZES = [128, 256, 128]
OUTPUT_SIZE = 85
OUTPUT_PADDED = 128          # lane-dense output width (multiple of 128)
BN_EPS = 1e-5


# ---------------------------------------------------------------------------
# Kernel
# ---------------------------------------------------------------------------
def _hea_kernel(x_ref,
                w1_ref, b1_ref,
                w2_ref, b2_ref,
                w3_ref, b3_ref,
                w4_ref, b4_ref,
                o_ref):
    """Fused MLP forward for one batch tile. All weights resident in VMEM.

    Weights are bf16 [in, out] with inference-BN pre-folded; biases are f32
    [1, out].  Matmuls run on the MXU with f32 accumulation; the epilogue
    (bias + ReLU) happens in f32 and is immediately downcast to bf16 so the
    activation carried between layers is bf16 (half the spill traffic of f32).
    """
    h = x_ref[...].astype(jnp.bfloat16)          # [tile, 32] bf16

    # Blocks 1-3: (Linear + folded BN) -> ReLU.  Dropout = identity (eval).
    for w_ref, b_ref in ((w1_ref, b1_ref), (w2_ref, b2_ref), (w3_ref, b3_ref)):
        acc = jnp.dot(h, w_ref[...], preferred_element_type=jnp.float32)
        acc = acc + b_ref[...]
        h = jnp.maximum(acc, 0.0).astype(jnp.bfloat16)   # fused epilogue

    # Final Linear (output zero-padded to 128 lanes), stored as bf16.
    out = jnp.dot(h, w4_ref[...], preferred_element_type=jnp.float32) + b4_ref[...]
    o_ref[...] = out.astype(o_ref.dtype)


# ---------------------------------------------------------------------------
# Wrapper
# ---------------------------------------------------------------------------
def _round_up(n, m):
    return ((n + m - 1) // m) * m


def _choose_batch_tile(B, max_tile=512):
    """Pick a batch tile.

    - v7x: grid gets >= 2 steps whenever B >= 16 so both TensorCores work.
    - v5e/v6e: tile grows up to max_tile to amortize per-grid-step overhead.
    - Always a multiple of 8 (sublane) and never larger than B.
    """
    if B <= 8:
        return B                       # full-dim block; (8,128) rule waived
    return min(max_tile, max(8, _round_up(pl.cdiv(B, 2), 8)))


def hea_forward(x, params, *, batch_tile=None, max_tile=512, raw_output=False):
    """x: [B, INPUT_SIZE] float32 -> [B, OUTPUT_SIZE] float32
    (or, with raw_output=True, the padded [B, OUTPUT_PADDED] bf16 buffer)."""
    B, F = x.shape
    assert F == INPUT_SIZE

    if batch_tile is None:
        batch_tile = _choose_batch_tile(B, max_tile)
    num_tiles = pl.cdiv(B, batch_tile)   # ragged last block handled by Pallas

    def full_spec(arr):
        # Whole parameter array resident for every grid step (constant block
        # index -> Mosaic does not re-fetch it per step).
        return pl.BlockSpec(arr.shape, lambda i: (0, 0))

    in_specs = [pl.BlockSpec((batch_tile, INPUT_SIZE), lambda i: (i, 0))]
    in_specs += [full_spec(p) for p in params]
    out_spec = pl.BlockSpec((batch_tile, OUTPUT_PADDED), lambda i: (i, 0))

    # Advisory cost hint for XLA's scheduler (bf16 output -> 2 bytes/elem).
    flops_per_row = 2 * (INPUT_SIZE * HIDDEN_SIZES[0]
                         + HIDDEN_SIZES[0] * HIDDEN_SIZES[1]
                         + HIDDEN_SIZES[1] * HIDDEN_SIZES[2]
                         + HIDDEN_SIZES[2] * OUTPUT_PADDED)
    param_bytes = sum(int(p.size) * p.dtype.itemsize for p in params)
    cost = pl.CostEstimate(
        flops=int(B * flops_per_row),
        transcendentals=0,
        bytes_accessed=int(B * (INPUT_SIZE * 4 + OUTPUT_PADDED * 2) + param_bytes),
    )

    out = pl.pallas_call(
        _hea_kernel,
        out_shape=jax.ShapeDtypeStruct((B, OUTPUT_PADDED), jnp.bfloat16),
        grid_spec=pltpu.PrefetchScalarGridSpec(
            num_scalar_prefetch=0,
            grid=(num_tiles,),
            in_specs=in_specs,
            out_specs=out_spec,
        ),
        compiler_params=pltpu.CompilerParams(
            dimension_semantics=("parallel",)),
        cost_estimate=cost,
    )(x, *params)

    if raw_output:
        return out                       # [B, 128] bf16 — fuse slice downstream
    return out[:, :OUTPUT_SIZE].astype(jnp.float32)


# ---------------------------------------------------------------------------
# Parameters (deterministic init mirroring the PyTorch module)
# ---------------------------------------------------------------------------
def init_params_f32(key):
    """f32 params with inference BatchNorm folded and the final layer padded.

    Linear(in, out): weight stored transposed as [in, out], bias as [1, out].
    BatchNorm1d(out) in eval mode (gamma=1, beta=0, running_mean=0,
    running_var=1) is folded:  W' = W * s,  b' = b * s + t,
    with s = gamma / sqrt(var + eps), t = beta - mean * s.
    For a trained checkpoint, fold the real running stats here (in f32,
    before the bf16 cast in to_kernel_params).
    """
    sizes = [INPUT_SIZE] + HIDDEN_SIZES + [OUTPUT_SIZE]
    params = []
    keys = jax.random.split(key, len(sizes) - 1)
    for li in range(len(sizes) - 1):
        fan_in, fan_out = sizes[li], sizes[li + 1]
        kw, kb = jax.random.split(keys[li])
        bound = 1.0 / jnp.sqrt(fan_in)
        W = jax.random.uniform(kw, (fan_in, fan_out), jnp.float32, -bound, bound)
        b = jax.random.uniform(kb, (1, fan_out), jnp.float32, -bound, bound)

        if li < len(HIDDEN_SIZES):
            gamma = jnp.ones((1, fan_out), jnp.float32)
            beta = jnp.zeros((1, fan_out), jnp.float32)
            mean = jnp.zeros((1, fan_out), jnp.float32)
            var = jnp.ones((1, fan_out), jnp.float32)
            s = gamma / jnp.sqrt(var + BN_EPS)
            t = beta - mean * s
            W = W * s
            b = b * s + t
        else:
            pad = OUTPUT_PADDED - fan_out
            W = jnp.pad(W, ((0, 0), (0, pad)))
            b = jnp.pad(b, ((0, 0), (0, pad)))

        params.append(W)
        params.append(b)
    return tuple(params)


def to_kernel_params(params_f32):
    """bf16 weights (MXU-native), f32 biases."""
    out = []
    for i, p in enumerate(params_f32):
        out.append(p.astype(jnp.bfloat16) if i % 2 == 0 else p.astype(jnp.float32))
    return tuple(out)


# ---------------------------------------------------------------------------
# References
# ---------------------------------------------------------------------------
def hea_reference_quantized(x, kernel_params):
    """Pure-JAX reference applying the *identical* bf16 quantization steps."""
    (w1, b1, w2, b2, w3, b3, w4, b4) = kernel_params
    h = x.astype(jnp.bfloat16)
    for W, b in ((w1, b1), (w2, b2), (w3, b3)):
        h = jnp.dot(h, W, preferred_element_type=jnp.float32) + b
        h = jnp.maximum(h, 0.0).astype(jnp.bfloat16)
    out = jnp.dot(h, w4, preferred_element_type=jnp.float32) + b4
    return out.astype(jnp.bfloat16)[:, :OUTPUT_SIZE].astype(jnp.float32)


def hea_reference_f32(x, params_f32):
    """Full-precision reference of the original module's eval-mode forward."""
    (w1, b1, w2, b2, w3, b3, w4, b4) = params_f32
    h = x
    for W, b in ((w1, b1), (w2, b2), (w3, b3)):
        h = jnp.maximum(jnp.dot(h, W) + b, 0.0)
    return (jnp.dot(h, w4) + b4)[:, :OUTPUT_SIZE]


# ---------------------------------------------------------------------------
if __name__ == "__main__":
    key = jax.random.PRNGKey(0)
    k_param, k_x = jax.random.split(key)

    params_f32 = init_params_f32(k_param)
    kernel_params = to_kernel_params(params_f32)

    # B=500 is not a multiple of the chosen tile (256), so this exercises the
    # ragged last block (no wrapper-side padding) and a 2-step parallel grid.
    B = 500
    x = jax.random.normal(k_x, (B, INPUT_SIZE), jnp.float32)

    out = hea_forward(x, kernel_params)
    out = jax.block_until_ready(out)
    assert out.shape == (B, OUTPUT_SIZE)

    # Check 1: against a reference with identical bf16 quantization (tight).
    ref_q = hea_reference_quantized(x, kernel_params)
    assert jnp.allclose(out, ref_q, atol=2e-2, rtol=2e-2), \
        "mismatch vs quantized reference"

    # Check 2: against the full-f32 eval-mode forward of the original module.
    # bf16 weights/activations/output bound the error to a few percent.
    ref_f32 = hea_reference_f32(x, params_f32)
    assert jnp.allclose(out, ref_f32, atol=5e-2, rtol=5e-2), \
        "mismatch vs f32 reference"

    print("KERNEL_OK")
</pallas_src>

<mosaic_0001>
module attributes {stable_mosaic.version = 11 : i64} {
  func.func @_hea_kernel(%arg0: i32, %arg1: memref<256x32xf32, #tpu.memory_space<vmem>>, %arg2: memref<32x128xbf16, #tpu.memory_space<vmem>>, %arg3: memref<1x128xf32, #tpu.memory_space<vmem>>, %arg4: memref<128x256xbf16, #tpu.memory_space<vmem>>, %arg5: memref<1x256xf32, #tpu.memory_space<vmem>>, %arg6: memref<256x128xbf16, #tpu.memory_space<vmem>>, %arg7: memref<1x128xf32, #tpu.memory_space<vmem>>, %arg8: memref<128x128xbf16, #tpu.memory_space<vmem>>, %arg9: memref<1x128xf32, #tpu.memory_space<vmem>>, %arg10: memref<256x128xbf16, #tpu.memory_space<vmem>>) attributes {dimension_semantics = [#tpu.dimension_semantics<parallel>], iteration_bounds = array<i64: 2>, scalar_prefetch = 0 : i64, scratch_operands = 0 : i64, tpu.core_type = #tpu.core_type<tc>, window_params = [{transform_indices = @transform_0, window_bounds = array<i64: 256, 32>}, {pipeline_mode = #tpu.pipeline_mode<synchronous>, transform_indices = @transform_1, window_bounds = array<i64: 32, 128>}, {pipeline_mode = #tpu.pipeline_mode<synchronous>, transform_indices = @transform_2, window_bounds = array<i64: 1, 128>}, {pipeline_mode = #tpu.pipeline_mode<synchronous>, transform_indices = @transform_3, window_bounds = array<i64: 128, 256>}, {pipeline_mode = #tpu.pipeline_mode<synchronous>, transform_indices = @transform_4, window_bounds = array<i64: 1, 256>}, {pipeline_mode = #tpu.pipeline_mode<synchronous>, transform_indices = @transform_5, window_bounds = array<i64: 256, 128>}, {pipeline_mode = #tpu.pipeline_mode<synchronous>, transform_indices = @transform_6, window_bounds = array<i64: 1, 128>}, {pipeline_mode = #tpu.pipeline_mode<synchronous>, transform_indices = @transform_7, window_bounds = array<i64: 128, 128>}, {pipeline_mode = #tpu.pipeline_mode<synchronous>, transform_indices = @transform_8, window_bounds = array<i64: 1, 128>}, {transform_indices = @transform_9, window_bounds = array<i64: 256, 128>}]} {
    %c0 = arith.constant 0 : index
    %c0_0 = arith.constant 0 : index
    %0 = vector.load %arg1[%c0, %c0_0] : memref<256x32xf32, #tpu.memory_space<vmem>>, vector<256x32xf32>
    %1 = arith.truncf %0 : vector<256x32xf32> to vector<256x32xbf16>
    %c0_1 = arith.constant 0 : index
    %c0_2 = arith.constant 0 : index
    %2 = vector.load %arg2[%c0_1, %c0_2] : memref<32x128xbf16, #tpu.memory_space<vmem>>, vector<32x128xbf16>
    %cst = arith.constant dense<0.000000e+00> : vector<256x128xf32>
    %3 = tpu.matmul %1, %2, %cst {dimension_numbers = #tpu.dot_dimension_numbers<[1], [0], [0], [1], [0, 0, 1, 1], [], []>} : vector<256x32xbf16>, vector<32x128xbf16>, vector<256x128xf32> -> vector<256x128xf32>
    %c0_3 = arith.constant 0 : index
    %c0_4 = arith.constant 0 : index
    %4 = vector.load %arg3[%c0_3, %c0_4] : memref<1x128xf32, #tpu.memory_space<vmem>>, vector<1x128xf32>
    %5 = vector.broadcast %4 : vector<1x128xf32> to vector<256x128xf32>
    %6 = arith.addf %3, %5 : vector<256x128xf32>
    %cst_5 = arith.constant 0.000000e+00 : f32
    %7 = vector.broadcast %cst_5 : f32 to vector<256x128xf32>
    %8 = arith.maximumf %6, %7 : vector<256x128xf32>
    %9 = arith.truncf %8 : vector<256x128xf32> to vector<256x128xbf16>
    %c0_6 = arith.constant 0 : index
    %c0_7 = arith.constant 0 : index
    %10 = vector.load %arg4[%c0_6, %c0_7] : memref<128x256xbf16, #tpu.memory_space<vmem>>, vector<128x256xbf16>
    %cst_8 = arith.constant dense<0.000000e+00> : vector<256x256xf32>
    %11 = tpu.matmul %9, %10, %cst_8 {dimension_numbers = #tpu.dot_dimension_numbers<[1], [0], [0], [1], [0, 0, 1, 1], [], []>} : vector<256x128xbf16>, vector<128x256xbf16>, vector<256x256xf32> -> vector<256x256xf32>
    %c0_9 = arith.constant 0 : index
    %c0_10 = arith.constant 0 : index
    %12 = vector.load %arg5[%c0_9, %c0_10] : memref<1x256xf32, #tpu.memory_space<vmem>>, vector<1x256xf32>
    %13 = vector.broadcast %12 : vector<1x256xf32> to vector<256x256xf32>
    %14 = arith.addf %11, %13 : vector<256x256xf32>
    %cst_11 = arith.constant 0.000000e+00 : f32
    %15 = vector.broadcast %cst_11 : f32 to vector<256x256xf32>
    %16 = arith.maximumf %14, %15 : vector<256x256xf32>
    %17 = arith.truncf %16 : vector<256x256xf32> to vector<256x256xbf16>
    %c0_12 = arith.constant 0 : index
    %c0_13 = arith.constant 0 : index
    %18 = vector.load %arg6[%c0_12, %c0_13] : memref<256x128xbf16, #tpu.memory_space<vmem>>, vector<256x128xbf16>
    %cst_14 = arith.constant dense<0.000000e+00> : vector<256x128xf32>
    %19 = tpu.matmul %17, %18, %cst_14 {dimension_numbers = #tpu.dot_dimension_numbers<[1], [0], [0], [1], [0, 0, 1, 1], [], []>} : vector<256x256xbf16>, vector<256x128xbf16>, vector<256x128xf32> -> vector<256x128xf32>
    %c0_15 = arith.constant 0 : index
    %c0_16 = arith.constant 0 : index
    %20 = vector.load %arg7[%c0_15, %c0_16] : memref<1x128xf32, #tpu.memory_space<vmem>>, vector<1x128xf32>
    %21 = vector.broadcast %20 : vector<1x128xf32> to vector<256x128xf32>
    %22 = arith.addf %19, %21 : vector<256x128xf32>
    %cst_17 = arith.constant 0.000000e+00 : f32
    %23 = vector.broadcast %cst_17 : f32 to vector<256x128xf32>
    %24 = arith.maximumf %22, %23 : vector<256x128xf32>
    %25 = arith.truncf %24 : vector<256x128xf32> to vector<256x128xbf16>
    %c0_18 = arith.constant 0 : index
    %c0_19 = arith.constant 0 : index
    %26 = vector.load %arg8[%c0_18, %c0_19] : memref<128x128xbf16, #tpu.memory_space<vmem>>, vector<128x128xbf16>
    %cst_20 = arith.constant dense<0.000000e+00> : vector<256x128xf32>
    %27 = tpu.matmul %25, %26, %cst_20 {dimension_numbers = #tpu.dot_dimension_numbers<[1], [0], [0], [1], [0, 0, 1, 1], [], []>} : vector<256x128xbf16>, vector<128x128xbf16>, vector<256x128xf32> -> vector<256x128xf32>
    %c0_21 = arith.constant 0 : index
    %c0_22 = arith.constant 0 : index
    %28 = vector.load %arg9[%c0_21, %c0_22] : memref<1x128xf32, #tpu.memory_space<vmem>>, vector<1x128xf32>
    %29 = vector.broadcast %28 : vector<1x128xf32> to vector<256x128xf32>
    %30 = arith.addf %27, %29 : vector<256x128xf32>
    %31 = arith.truncf %30 : vector<256x128xf32> to vector<256x128xbf16>
    %c0_23 = arith.constant 0 : index
    %c0_24 = arith.constant 0 : index
    %32 = vector.load %arg10[%c0_23, %c0_24] : memref<256x128xbf16, #tpu.memory_space<vmem>>, vector<256x128xbf16>
    tpu.vector_store %arg10[%c0_23, %c0_24], %31 {strides = array<i32>} : memref<256x128xbf16, #tpu.memory_space<vmem>>, vector<256x128xbf16>,
    return
  }
  func.func @transform_0(%arg0: i32) -> (i32, i32) {
    %c0_i32 = arith.constant 0 : i32
    %c0_i32_0 = arith.constant 0 : i32
    return %arg0, %c0_i32 : i32, i32
  }
  func.func @transform_1(%arg0: i32) -> (i32, i32) {
    %c0_i32 = arith.constant 0 : i32
    %c0_i32_0 = arith.constant 0 : i32
    %c0_i32_1 = arith.constant 0 : i32
    return %c0_i32, %c0_i32_0 : i32, i32
  }
  func.func @transform_2(%arg0: i32) -> (i32, i32) {
    %c0_i32 = arith.constant 0 : i32
    %c0_i32_0 = arith.constant 0 : i32
    %c0_i32_1 = arith.constant 0 : i32
    return %c0_i32, %c0_i32_0 : i32, i32
  }
  func.func @transform_3(%arg0: i32) -> (i32, i32) {
    %c0_i32 = arith.constant 0 : i32
    %c0_i32_0 = arith.constant 0 : i32
    %c0_i32_1 = arith.constant 0 : i32
    return %c0_i32, %c0_i32_0 : i32, i32
  }
  func.func @transform_4(%arg0: i32) -> (i32, i32) {
    %c0_i32 = arith.constant 0 : i32
    %c0_i32_0 = arith.constant 0 : i32
    %c0_i32_1 = arith.constant 0 : i32
    return %c0_i32, %c0_i32_0 : i32, i32
  }
  func.func @transform_5(%arg0: i32) -> (i32, i32) {
    %c0_i32 = arith.constant 0 : i32
    %c0_i32_0 = arith.constant 0 : i32
    %c0_i32_1 = arith.constant 0 : i32
    return %c0_i32, %c0_i32_0 : i32, i32
  }
  func.func @transform_6(%arg0: i32) -> (i32, i32) {
    %c0_i32 = arith.constant 0 : i32
    %c0_i32_0 = arith.constant 0 : i32
    %c0_i32_1 = arith.constant 0 : i32
    return %c0_i32, %c0_i32_0 : i32, i32
  }
  func.func @transform_7(%arg0: i32) -> (i32, i32) {
    %c0_i32 = arith.constant 0 : i32
    %c0_i32_0 = arith.constant 0 : i32
    %c0_i32_1 = arith.constant 0 : i32
    return %c0_i32, %c0_i32_0 : i32, i32
  }
  func.func @transform_8(%arg0: i32) -> (i32, i32) {
    %c0_i32 = arith.constant 0 : i32
    %c0_i32_0 = arith.constant 0 : i32
    %c0_i32_1 = arith.constant 0 : i32
    return %c0_i32, %c0_i32_0 : i32, i32
  }
  func.func @transform_9(%arg0: i32) -> (i32, i32) {
    %c0_i32 = arith.constant 0 : i32
    %c0_i32_0 = arith.constant 0 : i32
    return %arg0, %c0_i32 : i32, i32
  }
}

</mosaic_0001>

<bundles_post_ra>
// kernel: tpu_custom_call.1
= control target key start
LH: loop header
LB: loop body
LE: loop exit
PB: predicated region body
PF: predicated region fallthrough
CT: control target
= control target key end

     0   :  { %14 = vsyncpa [#allocation3], 0  ;;  %s3120_s0 = inlined_call_operand.vmem [shape: f32[500,32], index: 0, kind: input, shape index: {}]   ;;  %s3121_s1 = inlined_call_operand.vmem [shape: bf16[32,128], index: 1, kind: input, shape index: {}]   ;;  %s3122_s2 = inlined_call_operand.vmem [shape: f32[1,128], index: 2, kind: input, shape index: {}]   ;;  %s3123_s3 = inlined_call_operand.vmem [shape: bf16[128,256], index: 3, kind: input, shape index: {}]   ;;  %s3124_s4 = inlined_call_operand.vmem [shape: f32[1,256], index: 4, kind: input, shape index: {}]   ;;  %s3125_s5 = inlined_call_operand.vmem [shape: bf16[256,128], index: 5, kind: input, shape index: {}]   ;;  %s3126_s6 = inlined_call_operand.vmem [shape: f32[1,128], index: 6, kind: input, shape index: {}]   ;;  %s3127_s7 = inlined_call_operand.vmem [shape: bf16[128,128], index: 7, kind: input, shape index: {}]   ;;  %s3128_s8 = inlined_call_operand.vmem [shape: f32[1,128], index: 8, kind: input, shape index: {}]   ;;  %s3129_s9 = inlined_call_operand.hbm [shape: bf16[500,128], index: 9, kind: output, shape index: {}]  }
   0x1   :  { %16 = vsyncpa [#allocation3 + $0x1], 0  ;;  %s2603_s30 = smov 0   ;;  %s2605_s10 = smov 0  }
   0x2   :  { %s2607_s11 = smov 0   ;;  %s2609_s12 = smov 0  }
   0x3 LB: > { %s2624_s13 = sadd.s32 4294967295, %s2547_s12   ;;  %s1903_s14 = sadd.s32 4294967294, %s2547_s12   ;;  %s2547_s12 = sphi %s2609_s12, %s3135_s12   ;;  %s2543_s11 = sphi %s2607_s11, %s3134_s11   ;;  %s2539_s10 = sphi %s2605_s10, %s3133_s10   ;;  %s2535_s30 = sphi %s2603_s30, %s3132_s30  }
   0x4   : > { %s2628_s15 = sadd.s32 1, %s2547_s12   ;;  %s223_s16 = sadd.s32 1, %s2543_s11 }
   0x5   : > { %s220_s17 = ssub.s32 %s2547_s12, %s2628_s15  ;;  %p233_p0 = scmp.ne.s32.totalorder %s2543_s11, %s2539_s10 }
   0x6   : > { %p221_p1 = scmp.eq.s32.totalorder %s220_s17, 0  ;;  %p234_p2 = scmp.eq.s32.totalorder %s2624_s13, 1 }
   0x7   : > { %p239_p3 = scmp.ne.s32.totalorder %s2539_s10, %s2535_s30  ;;  %p240_p4 = scmp.eq.s32.totalorder %s1903_s14, 1 }
   0x8   : > { %s2639_s18 = scalar_select %p221_p1, %s2543_s11, %s223_s16  }
   0x9   : > { %p2641_p5 = por %p234_p2, %p233_p0  ;;  %p2645_p6 = por %p240_p4, %p239_p3 }
   0xa   : > { %p1906_p7 = scmp.ge.s32.totalorder %s2547_s12, 1  ;;  %p299_p8 = scmp.lt.s32.totalorder %s2547_s12, 3 }
   0xc   : > { %p300_p9 = pnand %p1906_p7, %p299_p8 }
   0xd   : > { %v2435_v0 = vld [vmem:[%s3121_s1] sm:$0xff] (!%p300_p9)   ;;  %s2655_s23 = sshll.u32 (!%p300_p9), %s2624_s13, 5  ;;  %v2436_v1 = vld [vmem:[%s3121_s1 + $0x8] sm:$0xff] (!%p300_p9)   ;;  %v2440_v4 = vld [vmem:[%s3123_s3 + $0x14] ss:$8 sps:$4 sm:$0xff] (!%p300_p9)   ;;  %vm430_vm0 = vcmask (!%p300_p9), 261120  }
   0xe   : > { %303 = sbr.rel (%p300_p9) target bundleno = 1063 (0x427), region = 56  ;;  %p344_p10 = scmp.lt.s32.totalorder (!%p300_p9), %s2655_s23, 62  ;;  %2294 = vmatprep.subr.bf16.mxu0 (!%p300_p9), %v2435_v0  ;;  %v2437_v2 = vld [vmem:[%s3123_s3 + $0x4] ss:$8 sps:$4 sm:$0xff] (!%p300_p9)   ;;  %v2439_v3 = vld [vmem:[%s3123_s3] ss:$8 sps:$4 sm:$0xff] (!%p300_p9)  }
   0xf   : > { %2295 = vmatpush3.bf16.msra.mxu0 (!%p300_p9), %v2435_v0  ;;  %796 = vmatprep.subr.bf16.mxu1 (!%p300_p9), %v2437_v2  ;;  %v2442_v5 = vld [vmem:[%s3123_s3 + $0x10] ss:$8 sps:$4 sm:$0xff] (!%p300_p9)   ;;  %v2443_v6 = vld [vmem:[%s3123_s3 + $0x24] ss:$8 sps:$4 sm:$0xff] (!%p300_p9)   ;;  %v2445_v16 = vld [vmem:[%s3123_s3 + $0x20] ss:$8 sps:$4 sm:$0xff] (!%p300_p9)  }
  0x10   : > { %2296 = vmatprep.subr.bf16.mxu0 (!%p300_p9), %v2436_v1  ;;  %797 = vmatpush1.bf16.msra.mxu1 (!%p300_p9), %v2439_v3  ;;  %v2446_v17 = vld [vmem:[%s3123_s3 + $0x34] ss:$8 sps:$4 sm:$0xff] (!%p300_p9)   ;;  %v2448_v24 = vld [vmem:[%s3123_s3 + $0x30] ss:$8 sps:$4 sm:$0xff] (!%p300_p9)   ;;  %v2449_v27 = vld [vmem:[%s3123_s3 + $0x44] ss:$8 sps:$4 sm:$0xff] (!%p300_p9)  }
  0x11   : > { %798 = vmatprep.subr.bf16.mxu1 (!%p300_p9), %v2440_v4  ;;  %v2451_v29 = vld [vmem:[%s3123_s3 + $0x40] ss:$8 sps:$4 sm:$0xff] (!%p300_p9)   ;;  %v2452_v31 = vld [vmem:[%s3123_s3 + $0x54] ss:$8 sps:$4 sm:$0xff] (!%p300_p9)   ;;  %v2454_v32 = vld [vmem:[%s3123_s3 + $0x50] ss:$8 sps:$4 sm:$0xff] (!%p300_p9)  }
  0x12   : > { %v2455_v62 = vld [vmem:[%s3123_s3 + $0x64] ss:$8 sps:$4 sm:$0xff] (!%p300_p9)   ;;  %v2457_v63 = vld [vmem:[%s3123_s3 + $0x60] ss:$8 sps:$4 sm:$0xff] (!%p300_p9)   ;;  %v2458_v0 = vld [vmem:[%s3123_s3 + $0x74] ss:$8 sps:$4 sm:$0xff] (!%p300_p9)  }
  0x13   : > { %2297 = vmatpush3.bf16.msra.mxu0 (!%p300_p9), %v2436_v1  ;;  %v2460_v1 = vld [vmem:[%s3123_s3 + $0x70] ss:$8 sps:$4 sm:$0xff] (!%p300_p9)   ;;  %v2549_v2 = vmov (!%p300_p9), 0   ;;  %v2767_v3 = vld [vmem:[%s3122_s2] ss:$0 sm:$0xff] (!%p300_p9)  ;;  %s336_s16 = sand.u32 (!%p300_p9), 1, %s2539_s10  }
  0x14   : > { %799 = vmatpush1.bf16.msra.mxu1 (!%p300_p9), %v2442_v5  ;;  %828 = vmatprep.mubr.bf16.mxu1 (!%p300_p9), %v2549_v2  ;;  %s3059_s24 = scalar_lea.sflag (!%p300_p9), [#allocation3], %s336_s16 }
  0x15   : > { %s345_s28 = scalar_select %p344_p10, %s2655_s23, 62  ;;  %800 = vmatprep.subr.bf16.mxu1 %v2443_v6 }
  0x16   : > { %s1830_s25 = ssub.s32 (%p2641_p5), 63, %s2655_s23 }
  0x17   : > { %s1909_s21 = sshll.u32 %s345_s28, 3  ;;  %p1831_p11 = scmp.lt.s32.totalorder (%p2641_p5), %s1830_s25, 32 }
  0x18   : > { %s2677_s27 = scalar_lea.vmem %s3120_s0, %s1909_s21  ;;  %801 = vmatpush1.bf16.msra.mxu1 %v2445_v16  ;;  %s1907_s21 = sshll.u32 %s336_s16, 7 }
  0x19   : > { %v359_v7 = vld [vmem:[%s2677_s27] sm:$0xff]  ;;  %v360_v8 = vld [vmem:[%s2677_s27 + $0x8] sm:$0xff]  ;;  %v361_v9 = vld [vmem:[%s2677_s27 + $0x10] sm:$0xff]  ;;  %802 = vmatprep.subr.bf16.mxu1 %v2446_v17  ;;  %s3011_s22 = scalar_lea.vmem [#allocation2], %s1907_s21 }
  0x1a   : > { %v391_v10 = vpack.c.bf16 %v360_v8, %v359_v7  ;;  %v362_v11 = vld [vmem:[%s2677_s27 + $0x18] sm:$0xff]  ;;  %v363_v12 = vld [vmem:[%s2677_s27 + $0x20] sm:$0xff]  ;;  %v364_v13 = vld [vmem:[%s2677_s27 + $0x28] sm:$0xff] }
  0x1b   : > { %v392_v14 = vpack.c.bf16 %v362_v11, %v361_v9  ;;  %v393_v15 = vpack.c.bf16 %v364_v13, %v363_v12  ;;  %v365_v18 = vld [vmem:[%s2677_s27 + $0x30] sm:$0xff]  ;;  %v366_v19 = vld [vmem:[%s2677_s27 + $0x38] sm:$0xff]  ;;  %v367_v20 = vld [vmem:[%s2677_s27 + $0x40] sm:$0xff] }
  0x1c   : > { %2298 = vmatprep.mubr.msk.bf16.mxu0 %vm430_vm0, %v391_v10  ;;  %v368_v21 = vld [vmem:[%s2677_s27 + $0x48] sm:$0xff]  ;;  %v394_v22 = vpack.c.bf16 %v366_v19, %v365_v18  ;;  %v369_v25 = vld [vmem:[%s2677_s27 + $0x50] sm:$0xff]  ;;  %v370_v26 = vld [vmem:[%s2677_s27 + $0x58] sm:$0xff]  ;;  %803 = vmatpush1.bf16.msra.mxu1 %v2448_v24 }
  0x1d   : > { %2299 = vmatmul.mubr.msk.bf16.vlgmr.msra.gmra.mrb[0].mxu0 %vm430_vm0, %v392_v14  ;;  %v395_v23 = vpack.c.bf16 %v368_v21, %v367_v20  ;;  %v371_v28 = vld [vmem:[%s2677_s27 + $0x60] sm:$0xff]  ;;  %v372_v30 = vld [vmem:[%s2677_s27 + $0x68] sm:$0xff]  ;;  %804 = vmatprep.subr.bf16.mxu1 %v2449_v27  ;;  %v396_v33 = vpack.c.bf16 %v370_v26, %v369_v25  ;;  %v373_v35 = vld [vmem:[%s2677_s27 + $0x70] sm:$0xff] }
  0x1e   : > { %2302 = vmatprep.mubr.msk.bf16.mxu0 %vm430_vm0, %v393_v15  ;;  %v397_v34 = vpack.c.bf16 %v372_v30, %v371_v28  ;;  %v374_v36 = vld [vmem:[%s2677_s27 + $0x78] sm:$0xff]  ;;  %v375_v37 = vld [vmem:[%s2677_s27 + $0x80] sm:$0xff]  ;;  %v376_v38 = vld [vmem:[%s2677_s27 + $0x88] sm:$0xff] }
  0x1f   : > { %v398_v39 = vpack.c.bf16 %v374_v36, %v373_v35  ;;  %v399_v40 = vpack.c.bf16 %v376_v38, %v375_v37  ;;  %v377_v41 = vld [vmem:[%s2677_s27 + $0x90] sm:$0xff]  ;;  %v378_v42 = vld [vmem:[%s2677_s27 + $0x98] sm:$0xff]  ;;  %v379_v43 = vld [vmem:[%s2677_s27 + $0xa0] sm:$0xff] }
  0x20   : > { %805 = vmatpush1.bf16.msra.mxu1 %v2451_v29  ;;  %v380_v44 = vld [vmem:[%s2677_s27 + $0xa8] sm:$0xff]  ;;  %v400_v45 = vpack.c.bf16 %v378_v42, %v377_v41  ;;  %v381_v47 = vld [vmem:[%s2677_s27 + $0xb0] sm:$0xff]  ;;  %v382_v48 = vld [vmem:[%s2677_s27 + $0xb8] sm:$0xff] }
  0x21   : > { %806 = vmatprep.subr.bf16.mxu1 %v2452_v31  ;;  %v401_v46 = vpack.c.bf16 %v380_v44, %v379_v43  ;;  %v383_v49 = vld [vmem:[%s2677_s27 + $0xc0] sm:$0xff]  ;;  %v384_v50 = vld [vmem:[%s2677_s27 + $0xc8] sm:$0xff]  ;;  %v402_v51 = vpack.c.bf16 %v382_v48, %v381_v47  ;;  %v385_v53 = vld [vmem:[%s2677_s27 + $0xd0] sm:$0xff] }
  0x22   : > { %v403_v52 = vpack.c.bf16 %v384_v50, %v383_v49  ;;  %v386_v54 = vld [vmem:[%s2677_s27 + $0xd8] sm:$0xff]  ;;  %v387_v55 = vld [vmem:[%s2677_s27 + $0xe0] sm:$0xff]  ;;  %v388_v56 = vld [vmem:[%s2677_s27 + $0xe8] sm:$0xff] }
  0x23   : > { %v404_v57 = vpack.c.bf16 %v386_v54, %v385_v53  ;;  %v405_v58 = vpack.c.bf16 %v388_v56, %v387_v55  ;;  %v389_v59 = vld [vmem:[%s2677_s27 + $0xf0] sm:$0xff]  ;;  %v390_v60 = vld [vmem:[%s2677_s27 + $0xf8] sm:$0xff]  ;;  %v2461_v9 = vld [vmem:[%s3125_s5 + $0x40] sm:$0xff]  }
  0x24   : > { %807 = vmatpush1.bf16.msra.mxu1 %v2454_v32  ;;  %v406_v61 = vpack.c.bf16 %v390_v60, %v389_v59  ;;  %v2462_v10 = vld [vmem:[%s3125_s5] sm:$0xff]   ;;  %v2463_v11 = vld [vmem:[%s3125_s5 + $0x48] sm:$0xff]   ;;  %2158 = vmatprep.subr.bf16.mxu0 %v2461_v9  ;;  %v2465_v20 = vld [vmem:[%s3125_s5 + $0x50] sm:$0xff]  }
  0x25   : > { %2303 = vmatmul.mubr.msk.bf16.gmra.mrb[4].mxu0 %vm430_vm0, %v394_v22  ;;  %808 = vmatprep.subr.bf16.mxu1 %v2455_v62  ;;  %v2464_v17 = vld [vmem:[%s3125_s5 + $0x8] sm:$0xff]   ;;  %v2466_v26 = vld [vmem:[%s3125_s5 + $0x10] sm:$0xff]   ;;  %v2467_v29 = vld [vmem:[%s3125_s5 + $0x58] sm:$0xff]  }
  0x26   : > { %2306 = vmatprep.mubr.msk.bf16.mxu0 %vm430_vm0, %v395_v23  ;;  %2159 = vmatpush3.bf16.msra.mxu0 %v2462_v10  ;;  %v2468_v36 = vld [vmem:[%s3125_s5 + $0x18] sm:$0xff]   ;;  %v2469_v38 = vld [vmem:[%s3125_s5 + $0x60] sm:$0xff]   ;;  %v2471_v47 = vld [vmem:[%s3125_s5 + $0x68] sm:$0xff]  }
  0x27   : > { %2160 = vmatprep.subr.bf16.mxu0 %v2463_v11  ;;  %v2470_v44 = vld [vmem:[%s3125_s5 + $0x20] sm:$0xff]   ;;  %v2472_v54 = vld [vmem:[%s3125_s5 + $0x28] sm:$0xff]   ;;  %v2473_v56 = vld [vmem:[%s3125_s5 + $0x70] sm:$0xff]  }
  0x28   : > { %809 = vmatpush1.bf16.msra.mxu1 %v2457_v63  ;;  %v2474_v62 = vld [vmem:[%s3125_s5 + $0x30] sm:$0xff]  }
  0x29   : > { %810 = vmatprep.subr.bf16.mxu1 %v2458_v0 }
  0x2a   : > { %2161 = vmatpush3.bf16.msra.mxu0 %v2464_v17 }
  0x2b   : > { %2162 = vmatprep.subr.bf16.mxu0 %v2465_v20 }
  0x2c   : > { %811 = vmatpush1.bf16.msra.mxu1 %v2460_v1 }
  0x2d   : > { %2307 = vmatmul.mubr.msk.bf16.gmra.mrb[8].mxu0 %vm430_vm0, %v396_v33 }
  0x2e   : > { %2310 = vmatprep.mubr.msk.bf16.mxu0 %vm430_vm0, %v397_v34  ;;  %2163 = vmatpush3.bf16.msra.mxu0 %v2466_v26 }
  0x2f   : > { %2164 = vmatprep.subr.bf16.mxu0 %v2467_v29 }
  0x32   : > { %2165 = vmatpush3.bf16.msra.mxu0 %v2468_v36 }
  0x33   : > { %2166 = vmatprep.subr.bf16.mxu0 %v2469_v38 }
  0x35   : > { %2311 = vmatmul.mubr.msk.bf16.gmra.mrb[12].mxu0 %vm430_vm0, %v398_v39 }
  0x36   : > { %2314 = vmatprep.mubr.msk.bf16.mxu0 %vm430_vm0, %v399_v40  ;;  %2167 = vmatpush3.bf16.msra.mxu0 %v2470_v44 }
  0x37   : > { %2168 = vmatprep.subr.bf16.mxu0 %v2471_v47 }
  0x3a   : > { %2169 = vmatpush3.bf16.msra.mxu0 %v2472_v54 }
  0x3b   : > { %2170 = vmatprep.subr.bf16.mxu0 %v2473_v56 }
  0x3d   : > { %2315 = vmatmul.mubr.msk.bf16.gmra.mrb[16].mxu0 %vm430_vm0, %v400_v45 }
  0x3e   : > { %2318 = vmatprep.mubr.msk.bf16.mxu0 %vm430_vm0, %v401_v46  ;;  %2171 = vmatpush3.bf16.msra.mxu0 %v2474_v62 }
  0x45   : > { %2319 = vmatmul.mubr.msk.bf16.gmra.mrb[20].mxu0 %vm430_vm0, %v402_v51 }
  0x46   : > { %2322 = vmatprep.mubr.msk.bf16.mxu0 %vm430_vm0, %v403_v52 }
  0x4d   : > { %2323 = vmatmul.mubr.msk.bf16.gmra.mrb[24].mxu0 %vm430_vm0, %v404_v57 }
  0x4e   : > { %2326 = vmatprep.mubr.msk.bf16.mxu0 %vm430_vm0, %v405_v58 }
  0x55   : > { %2327 = vmatmul.mubr.msk.bf16.gmra.mrb[28].mxu0 %vm430_vm0, %v406_v61 }
  0xf0   : > { %v2300_v4 = vpop.f32.mrb[0].mxu0 }
  0xf1   : > { %v522_v5 = vadd.f32 %v2300_v4, %v2767_v3  ;;  %v513_v6 = vpop.f32.mrb[1].mxu0 }
  0xf2   : > { %v514_v7 = vadd.f32 %v2767_v3, %v513_v6  ;;  %v2301_v8 = vpop.f32.mrb[2].mxu0 }
  0xf3   : > { %v525_v12 = vadd.f32 %v2301_v8, %v2767_v3  ;;  %v516_v13 = vpop.f32.mrb[3].mxu0  ;;  %v642_v15 = vmax.f32 %v522_v5, 0.0 }
  0xf4   : > { %v517_v14 = vadd.f32 %v2767_v3, %v516_v13  ;;  %v640_v18 = vmax.f32 %v514_v7, 0.0 }
  0xf5   : > { %v643_v16 = vmax.f32 %v525_v12, 0.0 }
  0xf6   : > { %v641_v19 = vmax.f32 %v517_v14, 0.0 }
  0xf7   : > { %v673_v21 = vpack.c.bf16 %v643_v16, %v642_v15 }
  0xf8   : > { %v672_v22 = vpack.c.bf16 %v641_v19, %v640_v18  ;;  %v2304_v23 = vpop.f32.mrb[4].mxu0 }
  0xf9   : > { %v538_v24 = vadd.f32 %v2304_v23, %v2767_v3  ;;  %v529_v25 = vpop.f32.mrb[5].mxu0 }
  0xfa   : > { %829 = vmatmul.mubr.bf16.vlgmr.msra.gmra.mrb[0].mxu1 %v672_v22  ;;  %v530_v27 = vadd.f32 %v2767_v3, %v529_v25  ;;  %v2305_v28 = vpop.f32.mrb[6].mxu0 }
  0xfb   : > { %v646_v30 = vmax.f32 %v538_v24, 0.0  ;;  %v541_v31 = vadd.f32 %v2305_v28, %v2767_v3  ;;  %v532_v32 = vpop.f32.mrb[7].mxu0  ;;  %838 = vmatprep.mubr.bf16.mxu1 %v2549_v2 }
  0xfc   : > { %v644_v33 = vmax.f32 %v530_v27, 0.0  ;;  %v533_v34 = vadd.f32 %v2767_v3, %v532_v32 }
  0xfd   : > { %v647_v35 = vmax.f32 %v541_v31, 0.0 }
  0xfe   : > { %v645_v37 = vmax.f32 %v533_v34, 0.0 }
  0xff   : > { %v675_v39 = vpack.c.bf16 %v647_v35, %v646_v30 }
 0x100   : > { %v674_v40 = vpack.c.bf16 %v645_v37, %v644_v33  ;;  %v2308_v41 = vpop.f32.mrb[8].mxu0 }
 0x101   : > { %v554_v42 = vadd.f32 %v2308_v41, %v2767_v3  ;;  %v545_v43 = vpop.f32.mrb[9].mxu0 }
 0x102   : > { %839 = vmatmul.mubr.bf16.gmra.mrb[4].mxu1 %v673_v21  ;;  %v546_v45 = vadd.f32 %v2767_v3, %v545_v43  ;;  %v2309_v46 = vpop.f32.mrb[10].mxu0 }
 0x103   : > { %848 = vmatprep.mubr.bf16.mxu1 %v2549_v2  ;;  %v650_v48 = vmax.f32 %v554_v42, 0.0  ;;  %v557_v49 = vadd.f32 %v2309_v46, %v2767_v3  ;;  %v548_v50 = vpop.f32.mrb[11].mxu0 }
 0x104   : > { %v648_v51 = vmax.f32 %v546_v45, 0.0  ;;  %v549_v52 = vadd.f32 %v2767_v3, %v548_v50 }
 0x105   : > { %v651_v53 = vmax.f32 %v557_v49, 0.0 }
 0x106   : > { %v649_v55 = vmax.f32 %v549_v52, 0.0 }
 0x107   : > { %v677_v57 = vpack.c.bf16 %v651_v53, %v650_v48 }
 0x108   : > { %v676_v58 = vpack.c.bf16 %v649_v55, %v648_v51  ;;  %v2312_v59 = vpop.f32.mrb[12].mxu0 }
 0x109   : > { %v570_v60 = vadd.f32 %v2312_v59, %v2767_v3  ;;  %v561_v61 = vpop.f32.mrb[13].mxu0 }
 0x10a   : > { %849 = vmatmul.mubr.bf16.gmra.mrb[8].mxu1 %v674_v40  ;;  %v562_v63 = vadd.f32 %v2767_v3, %v561_v61  ;;  %v2313_v0 = vpop.f32.mrb[14].mxu0 }
 0x10b   : > { %858 = vmatprep.mubr.bf16.mxu1 %v2549_v2  ;;  %v654_v1 = vmax.f32 %v570_v60, 0.0  ;;  %v573_v4 = vadd.f32 %v2313_v0, %v2767_v3  ;;  %v564_v5 = vpop.f32.mrb[15].mxu0 }
 0x10c   : > { %v652_v6 = vmax.f32 %v562_v63, 0.0  ;;  %v565_v7 = vadd.f32 %v2767_v3, %v564_v5 }
 0x10d   : > { %v655_v8 = vmax.f32 %v573_v4, 0.0 }
 0x10e   : > { %v653_v9 = vmax.f32 %v565_v7, 0.0  ;;  %v706_v7 = vlaneseq }
 0x10f   : > { %v2830_v10 = vpack.c.bf16 %v655_v8, %v654_v1 }
 0x110   : > { %v678_v11 = vpack.c.bf16 %v653_v9, %v652_v6  ;;  %v2316_v12 = vpop.f32.mrb[16].mxu0  ;;  %v2476_v6 = vld [vmem:[%s3125_s5 + $0x38] sm:$0xff]   ;;  %v707_v8 = vshrl.u32 %v706_v7, 7 }
 0x111   : > { %v586_v13 = vadd.f32 %v2316_v12, %v2767_v3  ;;  %v577_v14 = vpop.f32.mrb[17].mxu0 }
 0x112   : > { %859 = vmatmul.mubr.bf16.gmra.mrb[12].mxu1 %v675_v39  ;;  %v578_v15 = vadd.f32 %v2767_v3, %v577_v14  ;;  %v2317_v16 = vpop.f32.mrb[18].mxu0  ;;  %v708_v9 = vsub.s32 0, %v707_v8 }
 0x113   : > { %868 = vmatprep.mubr.bf16.mxu1 %v2549_v2  ;;  %v658_v17 = vmax.f32 %v586_v13, 0.0  ;;  %v589_v18 = vadd.f32 %v2317_v16, %v2767_v3  ;;  %v580_v19 = vpop.f32.mrb[19].mxu0 }
 0x114   : > { %v656_v20 = vmax.f32 %v578_v15, 0.0  ;;  %v581_v21 = vadd.f32 %v2767_v3, %v580_v19 }
 0x115   : > { %v659_v22 = vmax.f32 %v589_v18, 0.0 }
 0x116   : > { %v657_v23 = vmax.f32 %v581_v21, 0.0 }
 0x117   : > { %v681_v24 = vpack.c.bf16 %v659_v22, %v658_v17 }
 0x118   : > { %v680_v25 = vpack.c.bf16 %v657_v23, %v656_v20  ;;  %v2320_v26 = vpop.f32.mrb[20].mxu0  ;;  %v2477_v20 = vld [vmem:[%s3127_s7] sm:$0xff]  }
 0x119   : > { %v602_v27 = vadd.f32 %v2320_v26, %v2767_v3  ;;  %v593_v28 = vpop.f32.mrb[21].mxu0  ;;  %2378 = vmatprep.subr.bf16.mxu1 %v2477_v20 }
 0x11a   : > { %869 = vmatmul.mubr.bf16.gmra.mrb[16].mxu1 %v676_v58  ;;  %v594_v29 = vadd.f32 %v2767_v3, %v593_v28  ;;  %v2321_v30 = vpop.f32.mrb[22].mxu0 }
 0x11b   : > { %878 = vmatprep.mubr.bf16.mxu1 %v2549_v2  ;;  %v662_v31 = vmax.f32 %v602_v27, 0.0  ;;  %v605_v32 = vadd.f32 %v2321_v30, %v2767_v3  ;;  %v596_v33 = vpop.f32.mrb[23].mxu0  ;;  %2386 = vmatpush3.bf16.msra.mxu1 %v2477_v20 }
 0x11c   : > { %v660_v34 = vmax.f32 %v594_v29, 0.0  ;;  %v597_v35 = vadd.f32 %v2767_v3, %v596_v33 }
 0x11d   : > { %v663_v36 = vmax.f32 %v605_v32, 0.0  ;;  %v2479_v32 = vld [vmem:[%s3127_s7 + $0x10] sm:$0xff]  }
 0x11e   : > { %v661_v37 = vmax.f32 %v597_v35, 0.0 }
 0x11f   : > { %v683_v38 = vpack.c.bf16 %v663_v36, %v662_v31 }
 0x120   : > { %v682_v39 = vpack.c.bf16 %v661_v37, %v660_v34  ;;  %v2324_v40 = vpop.f32.mrb[24].mxu0 }
 0x121   : > { %v618_v41 = vadd.f32 %v2324_v40, %v2767_v3  ;;  %v609_v42 = vpop.f32.mrb[25].mxu0 }
 0x122   : > { %879 = vmatmul.mubr.bf16.gmra.mrb[20].mxu1 %v677_v57  ;;  %v610_v43 = vadd.f32 %v2767_v3, %v609_v42  ;;  %v2325_v44 = vpop.f32.mrb[26].mxu0 }
 0x123   : > { %888 = vmatprep.mubr.bf16.mxu1 %v2549_v2  ;;  %v666_v45 = vmax.f32 %v618_v41, 0.0  ;;  %v621_v46 = vadd.f32 %v2325_v44, %v2767_v3  ;;  %v612_v47 = vpop.f32.mrb[27].mxu0 }
 0x124   : > { %v664_v48 = vmax.f32 %v610_v43, 0.0  ;;  %v613_v49 = vadd.f32 %v2767_v3, %v612_v47 }
 0x125   : > { %v667_v50 = vmax.f32 %v621_v46, 0.0 }
 0x126   : > { %v665_v51 = vmax.f32 %v613_v49, 0.0 }
 0x127   : > { %v685_v52 = vpack.c.bf16 %v667_v50, %v666_v45 }
 0x128   : > { %v684_v53 = vpack.c.bf16 %v665_v51, %v664_v48  ;;  %v2328_v54 = vpop.f32.mrb[28].mxu0 }
 0x129   : > { %v634_v55 = vadd.f32 %v2328_v54, %v2767_v3  ;;  %v625_v56 = vpop.f32.mrb[29].mxu0 }
 0x12a   : > { %889 = vmatmul.mubr.bf16.gmra.mrb[24].mxu1 %v678_v11  ;;  %v626_v57 = vadd.f32 %v2767_v3, %v625_v56  ;;  %v2329_v58 = vpop.f32.mrb[30].mxu0  ;;  %v712_v11 = vsub.s32 1, %v707_v8 }
 0x12b   : > { %898 = vmatprep.mubr.bf16.mxu1 %v2549_v2  ;;  %v670_v59 = vmax.f32 %v634_v55, 0.0  ;;  %v637_v60 = vadd.f32 %v2329_v58, %v2767_v3  ;;  %v628_v61 = vpop.f32.mrb[31].mxu0 }
 0x12c   : > { %v668_v62 = vmax.f32 %v626_v57, 0.0  ;;  %v629_v63 = vadd.f32 %v2767_v3, %v628_v61  ;;  %v2475_v3 = vld [vmem:[%s3125_s5 + $0x78] sm:$0xff]  }
 0x12d   : > { %v671_v0 = vmax.f32 %v637_v60, 0.0  ;;  %2172 = vmatprep.subr.bf16.mxu0 %v2475_v3 }
 0x12e   : > { %v669_v1 = vmax.f32 %v629_v63, 0.0  ;;  %2173 = vmatpush3.bf16.msra.mxu0 %v2476_v6 }
 0x12f   : > { %v687_v4 = vpack.c.bf16 %v671_v0, %v670_v59  ;;  %2330 = vmatprep.subr.bf16.mxu0 %v2477_v20 }
 0x130   : > { %v686_v5 = vpack.c.bf16 %v669_v1, %v668_v62 }
 0x132   : > { %899 = vmatmul.mubr.bf16.gmra.mrb[28].mxu1 %v2830_v10  ;;  %v704_v10 = vld [vmem:[%s3124_s4] sm:$0x3] }
 0x133   : > { %908 = vmatprep.mubr.bf16.mxu1 %v2549_v2  ;;  %v2870_v12 = vrot.slane %v704_v10, %v708_v9  ;;  %v2872_v13 = vrot.slane %v704_v10, %v712_v11 }
 0x13a   : > { %909 = vmatmul.mubr.bf16.gmra.mrb[32].mxu1 %v680_v25 }
 0x13b   : > { %918 = vmatprep.mubr.bf16.mxu1 %v2549_v2 }
 0x142   : > { %919 = vmatmul.mubr.bf16.gmra.mrb[36].mxu1 %v681_v24  ;;  %v2478_v24 = vld [vmem:[%s3127_s7 + $0x8] sm:$0xff]  }
 0x143   : > { %928 = vmatprep.mubr.bf16.mxu1 %v2549_v2  ;;  %2379 = vmatprep.subr.bf16.mxu1 %v2478_v24 }
 0x144   : > { %2387 = vmatpush3.bf16.msra.mxu1 %v2478_v24 }
 0x145   : > { %2380 = vmatprep.subr.bf16.mxu1 %v2479_v32 }
 0x148   : > { %2388 = vmatpush3.bf16.msra.mxu1 %v2479_v32 }
 0x14a   : > { %929 = vmatmul.mubr.bf16.gmra.mrb[40].mxu1 %v682_v39 }
 0x14b   : > { %938 = vmatprep.mubr.bf16.mxu1 %v2549_v2 }
 0x152   : > { %939 = vmatmul.mubr.bf16.gmra.mrb[44].mxu1 %v683_v38 }
 0x153   : > { %948 = vmatprep.mubr.bf16.mxu1 %v2549_v2 }
 0x15a   : > { %949 = vmatmul.mubr.bf16.gmra.mrb[48].mxu1 %v684_v53 }
 0x15b   : > { %958 = vmatprep.mubr.bf16.mxu1 %v2549_v2 }
 0x162   : > { %959 = vmatmul.mubr.bf16.gmra.mrb[52].mxu1 %v685_v52 }
 0x163   : > { %968 = vmatprep.mubr.bf16.mxu1 %v2549_v2 }
 0x16a   : > { %969 = vmatmul.mubr.bf16.gmra.mrb[56].mxu1 %v686_v5 }
 0x16b   : > { %978 = vmatprep.mubr.bf16.mxu1 %v2549_v2 }
 0x172   : > { %979 = vmatmul.mubr.bf16.gmra.mrb[60].mxu1 %v687_v4 }
 0x1cd   : > { %v830_v14 = vpop.f32.mrb[0].mxu1 }
 0x1ce   : > { %v831_v15 = vadd.f32 %v830_v14, %v2870_v12  ;;  %v832_v16 = vpop.f32.mrb[1].mxu1 }
 0x1cf   : > { %v833_v17 = vadd.f32 %v832_v16, %v2872_v13  ;;  %v834_v2 = vpop.f32.mrb[2].mxu1 }
 0x1d0   : > { %v835_v18 = vadd.f32 %v834_v2, %v2870_v12  ;;  %v836_v19 = vpop.f32.mrb[3].mxu1  ;;  %v989_v22 = vmax.f32 %v831_v15, 0.0 }
 0x1d1   : > { %v837_v21 = vadd.f32 %v836_v19, %v2872_v13  ;;  %v990_v25 = vmax.f32 %v833_v17, 0.0 }
 0x1d2   : > { %v991_v23 = vmax.f32 %v835_v18, 0.0 }
 0x1d3   : > { %v992_v26 = vmax.f32 %v837_v21, 0.0 }
 0x1d4   : > { %v1053_v27 = vpack.c.bf16 %v991_v23, %v989_v22 }
 0x1d5   : > { %v1054_v28 = vpack.c.bf16 %v992_v26, %v990_v25  ;;  %v840_v29 = vpop.f32.mrb[4].mxu1 }
 0x1d6   : > { %v841_v30 = vadd.f32 %v840_v29, %v2870_v12  ;;  %v842_v31 = vpop.f32.mrb[5].mxu1 }
 0x1d7   : > { %v843_v33 = vadd.f32 %v842_v31, %v2872_v13  ;;  %v844_v34 = vpop.f32.mrb[6].mxu1  ;;  %1252 = vmatprep.mubr.bf16.mxu0 %v1054_v28 }
 0x1d8   : > { %v845_v35 = vadd.f32 %v844_v34, %v2870_v12  ;;  %v846_v36 = vpop.f32.mrb[7].mxu1  ;;  %1253 = vmatmul.mubr.bf16.vlgmr.msra.gmra.mrb[32].mxu0 %v1053_v27  ;;  %v993_v38 = vmax.f32 %v841_v30, 0.0 }
 0x1d9   : > { %v847_v37 = vadd.f32 %v846_v36, %v2872_v13  ;;  %2331 = vmatpush3.bf16.msra.mxu0 %v2477_v20  ;;  %v994_v40 = vmax.f32 %v843_v33, 0.0 }
 0x1da   : > { %v995_v39 = vmax.f32 %v845_v35, 0.0  ;;  %2332 = vmatprep.subr.bf16.mxu0 %v2478_v24 }
 0x1db   : > { %v996_v41 = vmax.f32 %v847_v37, 0.0 }
 0x1dc   : > { %v1055_v42 = vpack.c.bf16 %v995_v39, %v993_v38 }
 0x1dd   : > { %v1056_v43 = vpack.c.bf16 %v996_v41, %v994_v40  ;;  %v850_v44 = vpop.f32.mrb[8].mxu1  ;;  %2333 = vmatpush3.bf16.msra.mxu0 %v2478_v24 }
 0x1de   : > { %v851_v45 = vadd.f32 %v850_v44, %v2870_v12  ;;  %v852_v46 = vpop.f32.mrb[9].mxu1  ;;  %2334 = vmatprep.subr.bf16.mxu0 %v2479_v32 }
 0x1df   : > { %v853_v47 = vadd.f32 %v852_v46, %v2872_v13  ;;  %v854_v48 = vpop.f32.mrb[10].mxu1  ;;  %1260 = vmatprep.mubr.bf16.mxu0 %v1056_v43 }
 0x1e0   : > { %v855_v49 = vadd.f32 %v854_v48, %v2870_v12  ;;  %v856_v50 = vpop.f32.mrb[11].mxu1  ;;  %1261 = vmatmul.mubr.bf16.gmra.mrb[36].mxu0 %v1055_v42  ;;  %v997_v52 = vmax.f32 %v851_v45, 0.0 }
 0x1e1   : > { %v857_v51 = vadd.f32 %v856_v50, %v2872_v13  ;;  %2335 = vmatpush3.bf16.msra.mxu0 %v2479_v32  ;;  %v998_v54 = vmax.f32 %v853_v47, 0.0 }
 0x1e2   : > { %v999_v53 = vmax.f32 %v855_v49, 0.0 }
 0x1e3   : > { %v1000_v55 = vmax.f32 %v857_v51, 0.0 }
 0x1e4   : > { %v1057_v56 = vpack.c.bf16 %v999_v53, %v997_v52 }
 0x1e5   : > { %v1058_v57 = vpack.c.bf16 %v1000_v55, %v998_v54  ;;  %v860_v58 = vpop.f32.mrb[12].mxu1 }
 0x1e6   : > { %v861_v59 = vadd.f32 %v860_v58, %v2870_v12  ;;  %v862_v60 = vpop.f32.mrb[13].mxu1 }
 0x1e7   : > { %v863_v61 = vadd.f32 %v862_v60, %v2872_v13  ;;  %v864_v62 = vpop.f32.mrb[14].mxu1  ;;  %1268 = vmatprep.mubr.bf16.mxu0 %v1058_v57 }
 0x1e8   : > { %v865_v63 = vadd.f32 %v864_v62, %v2870_v12  ;;  %v866_v0 = vpop.f32.mrb[15].mxu1  ;;  %1269 = vmatmul.mubr.bf16.gmra.mrb[40].mxu0 %v1057_v56  ;;  %v1001_v4 = vmax.f32 %v861_v59, 0.0 }
 0x1e9   : > { %v867_v1 = vadd.f32 %v866_v0, %v2872_v13  ;;  %v1002_v3 = vmax.f32 %v863_v61, 0.0 }
 0x1ea   : > { %v1003_v5 = vmax.f32 %v865_v63, 0.0 }
 0x1eb   : > { %v1004_v6 = vmax.f32 %v867_v1, 0.0 }
 0x1ec   : > { %v1059_v7 = vpack.c.bf16 %v1003_v5, %v1001_v4 }
 0x1ed   : > { %v1060_v8 = vpack.c.bf16 %v1004_v6, %v1002_v3  ;;  %v870_v9 = vpop.f32.mrb[16].mxu1 }
 0x1ee   : > { %v871_v10 = vadd.f32 %v870_v9, %v2870_v12  ;;  %v872_v11 = vpop.f32.mrb[17].mxu1 }
 0x1ef   : > { %v873_v14 = vadd.f32 %v872_v11, %v2872_v13  ;;  %v874_v15 = vpop.f32.mrb[18].mxu1  ;;  %1276 = vmatprep.mubr.bf16.mxu0 %v1060_v8 }
 0x1f0   : > { %v875_v16 = vadd.f32 %v874_v15, %v2870_v12  ;;  %v876_v17 = vpop.f32.mrb[19].mxu1  ;;  %1277 = vmatmul.mubr.bf16.gmra.mrb[44].mxu0 %v1059_v7  ;;  %v1005_v18 = vmax.f32 %v871_v10, 0.0 }
 0x1f1   : > { %v877_v2 = vadd.f32 %v876_v17, %v2872_v13  ;;  %v1006_v20 = vmax.f32 %v873_v14, 0.0 }
 0x1f2   : > { %v1007_v19 = vmax.f32 %v875_v16, 0.0 }
 0x1f3   : > { %v1008_v21 = vmax.f32 %v877_v2, 0.0 }
 0x1f4   : > { %v1061_v22 = vpack.c.bf16 %v1007_v19, %v1005_v18 }
 0x1f5   : > { %v1062_v23 = vpack.c.bf16 %v1008_v21, %v1006_v20  ;;  %v880_v24 = vpop.f32.mrb[20].mxu1 }
 0x1f6   : > { %v881_v25 = vadd.f32 %v880_v24, %v2870_v12  ;;  %v882_v26 = vpop.f32.mrb[21].mxu1 }
 0x1f7   : > { %v883_v27 = vadd.f32 %v882_v26, %v2872_v13  ;;  %v884_v28 = vpop.f32.mrb[22].mxu1  ;;  %1284 = vmatprep.mubr.bf16.mxu0 %v1062_v23 }
 0x1f8   : > { %v885_v29 = vadd.f32 %v884_v28, %v2870_v12  ;;  %v886_v30 = vpop.f32.mrb[23].mxu1  ;;  %1285 = vmatmul.mubr.bf16.gmra.mrb[48].mxu0 %v1061_v22  ;;  %v1009_v32 = vmax.f32 %v881_v25, 0.0 }
 0x1f9   : > { %v887_v31 = vadd.f32 %v886_v30, %v2872_v13  ;;  %v1010_v34 = vmax.f32 %v883_v27, 0.0 }
 0x1fa   : > { %v1011_v33 = vmax.f32 %v885_v29, 0.0 }
 0x1fb   : > { %v1012_v35 = vmax.f32 %v887_v31, 0.0 }
 0x1fc   : > { %v1063_v36 = vpack.c.bf16 %v1011_v33, %v1009_v32 }
 0x1fd   : > { %v1064_v37 = vpack.c.bf16 %v1012_v35, %v1010_v34  ;;  %v890_v38 = vpop.f32.mrb[24].mxu1 }
 0x1fe   : > { %v891_v39 = vadd.f32 %v890_v38, %v2870_v12  ;;  %v892_v40 = vpop.f32.mrb[25].mxu1 }
 0x1ff   : > { %v893_v41 = vadd.f32 %v892_v40, %v2872_v13  ;;  %v894_v42 = vpop.f32.mrb[26].mxu1  ;;  %1292 = vmatprep.mubr.bf16.mxu0 %v1064_v37 }
 0x200   : > { %v895_v43 = vadd.f32 %v894_v42, %v2870_v12  ;;  %v896_v44 = vpop.f32.mrb[27].mxu1  ;;  %1293 = vmatmul.mubr.bf16.gmra.mrb[52].mxu0 %v1063_v36  ;;  %v1013_v46 = vmax.f32 %v891_v39, 0.0 }
 0x201   : > { %v897_v45 = vadd.f32 %v896_v44, %v2872_v13  ;;  %v1014_v48 = vmax.f32 %v893_v41, 0.0 }
 0x202   : > { %v1015_v47 = vmax.f32 %v895_v43, 0.0 }
 0x203   : > { %v1016_v49 = vmax.f32 %v897_v45, 0.0 }
 0x204   : > { %v1065_v50 = vpack.c.bf16 %v1015_v47, %v1013_v46 }
 0x205   : > { %v1066_v51 = vpack.c.bf16 %v1016_v49, %v1014_v48  ;;  %v900_v52 = vpop.f32.mrb[28].mxu1 }
 0x206   : > { %v901_v53 = vadd.f32 %v900_v52, %v2870_v12  ;;  %v902_v54 = vpop.f32.mrb[29].mxu1 }
 0x207   : > { %v903_v55 = vadd.f32 %v902_v54, %v2872_v13  ;;  %v904_v56 = vpop.f32.mrb[30].mxu1  ;;  %1300 = vmatprep.mubr.bf16.mxu0 %v1066_v51  ;;  %v2480_v54 = vld [vmem:[%s3127_s7 + $0x18] sm:$0xff]  }
 0x208   : > { %v905_v57 = vadd.f32 %v904_v56, %v2870_v12  ;;  %v906_v58 = vpop.f32.mrb[31].mxu1  ;;  %1301 = vmatmul.mubr.bf16.gmra.mrb[56].mxu0 %v1065_v50  ;;  %v1017_v60 = vmax.f32 %v901_v53, 0.0  ;;  %2336 = vmatprep.subr.bf16.mxu0 %v2480_v54 }
 0x209   : > { %v907_v59 = vadd.f32 %v906_v58, %v2872_v13  ;;  %v1018_v62 = vmax.f32 %v903_v55, 0.0  ;;  %2381 = vmatprep.subr.bf16.mxu1 %v2480_v54  ;;  %2337 = vmatpush3.bf16.msra.mxu0 %v2480_v54 }
 0x20a   : > { %v1019_v61 = vmax.f32 %v905_v57, 0.0  ;;  %2389 = vmatpush3.bf16.msra.mxu1 %v2480_v54 }
 0x20b   : > { %v1020_v63 = vmax.f32 %v907_v59, 0.0 }
 0x20c   : > { %v1067_v0 = vpack.c.bf16 %v1019_v61, %v1017_v60 }
 0x20d   : > { %v1068_v1 = vpack.c.bf16 %v1020_v63, %v1018_v62  ;;  %v910_v4 = vpop.f32.mrb[32].mxu1  ;;  %v2481_v62 = vld [vmem:[%s3127_s7 + $0x20] sm:$0xff]  }
 0x20e   : > { %v911_v5 = vadd.f32 %v910_v4, %v2870_v12  ;;  %v912_v3 = vpop.f32.mrb[33].mxu1  ;;  %2338 = vmatprep.subr.bf16.mxu0 %v2481_v62  ;;  %2382 = vmatprep.subr.bf16.mxu1 %v2481_v62 }
 0x20f   : > { %v913_v6 = vadd.f32 %v912_v3, %v2872_v13  ;;  %v914_v7 = vpop.f32.mrb[34].mxu1  ;;  %1308 = vmatprep.mubr.bf16.mxu0 %v1068_v1  ;;  %2339 = vmatpush3.bf16.msra.mxu0 %v2481_v62 }
 0x210   : > { %v915_v8 = vadd.f32 %v914_v7, %v2870_v12  ;;  %v916_v9 = vpop.f32.mrb[35].mxu1  ;;  %1309 = vmatmul.mubr.bf16.gmra.mrb[60].mxu0 %v1067_v0  ;;  %v1021_v11 = vmax.f32 %v911_v5, 0.0  ;;  %v2482_v7 = vld [vmem:[%s3127_s7 + $0x28] sm:$0xff]   ;;  %2390 = vmatpush3.bf16.msra.mxu1 %v2481_v62 }
 0x211   : > { %v917_v10 = vadd.f32 %v916_v9, %v2872_v13  ;;  %v1022_v15 = vmax.f32 %v913_v6, 0.0  ;;  %2340 = vmatprep.subr.bf16.mxu0 %v2482_v7  ;;  %2383 = vmatprep.subr.bf16.mxu1 %v2482_v7 }
 0x212   : > { %v1023_v14 = vmax.f32 %v915_v8, 0.0 }
 0x213   : > { %v1024_v16 = vmax.f32 %v917_v10, 0.0  ;;  %2341 = vmatpush3.bf16.msra.mxu0 %v2482_v7 }
 0x214   : > { %v1069_v17 = vpack.c.bf16 %v1023_v14, %v1021_v11  ;;  %2391 = vmatpush3.bf16.msra.mxu1 %v2482_v7 }
 0x215   : > { %v1070_v2 = vpack.c.bf16 %v1024_v16, %v1022_v15  ;;  %v920_v18 = vpop.f32.mrb[36].mxu1 }
 0x216   : > { %v921_v19 = vadd.f32 %v920_v18, %v2870_v12  ;;  %v922_v20 = vpop.f32.mrb[37].mxu1 }
 0x217   : > { %v923_v21 = vadd.f32 %v922_v20, %v2872_v13  ;;  %v924_v22 = vpop.f32.mrb[38].mxu1  ;;  %1316 = vmatprep.mubr.bf16.mxu0 %v1070_v2 }
 0x218   : > { %v925_v23 = vadd.f32 %v924_v22, %v2870_v12  ;;  %v926_v24 = vpop.f32.mrb[39].mxu1  ;;  %1317 = vmatmul.mubr.bf16.gmra.mrb[64].mxu0 %v1069_v17  ;;  %v1025_v26 = vmax.f32 %v921_v19, 0.0  ;;  %v2483_v17 = vld [vmem:[%s3127_s7 + $0x30] sm:$0xff]  }
 0x219   : > { %v927_v25 = vadd.f32 %v926_v24, %v2872_v13  ;;  %v1026_v28 = vmax.f32 %v923_v21, 0.0  ;;  %2342 = vmatprep.subr.bf16.mxu0 %v2483_v17  ;;  %2384 = vmatprep.subr.bf16.mxu1 %v2483_v17  ;;  %v2484_v24 = vld [vmem:[%s3127_s7 + $0x38] sm:$0xff]  }
 0x21a   : > { %v1027_v27 = vmax.f32 %v925_v23, 0.0  ;;  %2343 = vmatpush3.bf16.msra.mxu0 %v2483_v17  ;;  %2392 = vmatpush3.bf16.msra.mxu1 %v2483_v17 }
 0x21b   : > { %v1028_v29 = vmax.f32 %v927_v25, 0.0  ;;  %2344 = vmatprep.subr.bf16.mxu0 %v2484_v24  ;;  %2385 = vmatprep.subr.bf16.mxu1 %v2484_v24 }
 0x21c   : > { %v1071_v30 = vpack.c.bf16 %v1027_v27, %v1025_v26 }
 0x21d   : > { %v1072_v31 = vpack.c.bf16 %v1028_v29, %v1026_v28  ;;  %v930_v32 = vpop.f32.mrb[40].mxu1 }
 0x21e   : > { %v931_v33 = vadd.f32 %v930_v32, %v2870_v12  ;;  %v932_v34 = vpop.f32.mrb[41].mxu1  ;;  %2345 = vmatpush3.bf16.msra.mxu0 %v2484_v24  ;;  %2393 = vmatpush3.bf16.msra.mxu1 %v2484_v24 }
 0x21f   : > { %v933_v35 = vadd.f32 %v932_v34, %v2872_v13  ;;  %v934_v36 = vpop.f32.mrb[42].mxu1  ;;  %1324 = vmatprep.mubr.bf16.mxu0 %v1072_v31 }
 0x220   : > { %v935_v37 = vadd.f32 %v934_v36, %v2870_v12  ;;  %v936_v38 = vpop.f32.mrb[43].mxu1  ;;  %1325 = vmatmul.mubr.bf16.gmra.mrb[68].mxu0 %v1071_v30  ;;  %v1029_v40 = vmax.f32 %v931_v33, 0.0 }
 0x221   : > { %v937_v39 = vadd.f32 %v936_v38, %v2872_v13  ;;  %v1030_v42 = vmax.f32 %v933_v35, 0.0 }
 0x222   : > { %v1031_v41 = vmax.f32 %v935_v37, 0.0 }
 0x223   : > { %v1032_v43 = vmax.f32 %v937_v39, 0.0 }
 0x224   : > { %v1073_v44 = vpack.c.bf16 %v1031_v41, %v1029_v40 }
 0x225   : > { %v1074_v45 = vpack.c.bf16 %v1032_v43, %v1030_v42  ;;  %v940_v46 = vpop.f32.mrb[44].mxu1 }
 0x226   : > { %v941_v47 = vadd.f32 %v940_v46, %v2870_v12  ;;  %v942_v48 = vpop.f32.mrb[45].mxu1 }
 0x227   : > { %v943_v49 = vadd.f32 %v942_v48, %v2872_v13  ;;  %v944_v50 = vpop.f32.mrb[46].mxu1  ;;  %1332 = vmatprep.mubr.bf16.mxu0 %v1074_v45 }
 0x228   : > { %v945_v51 = vadd.f32 %v944_v50, %v2870_v12  ;;  %v946_v52 = vpop.f32.mrb[47].mxu1  ;;  %1333 = vmatmul.mubr.bf16.gmra.mrb[72].mxu0 %v1073_v44  ;;  %v1033_v55 = vmax.f32 %v941_v47, 0.0 }
 0x229   : > { %v947_v53 = vadd.f32 %v946_v52, %v2872_v13  ;;  %v1034_v57 = vmax.f32 %v943_v49, 0.0 }
 0x22a   : > { %v1035_v56 = vmax.f32 %v945_v51, 0.0 }
 0x22b   : > { %v1036_v58 = vmax.f32 %v947_v53, 0.0 }
 0x22c   : > { %v1075_v59 = vpack.c.bf16 %v1035_v56, %v1033_v55 }
 0x22d   : > { %v1076_v60 = vpack.c.bf16 %v1036_v58, %v1034_v57  ;;  %v950_v61 = vpop.f32.mrb[48].mxu1 }
 0x22e   : > { %v951_v63 = vadd.f32 %v950_v61, %v2870_v12  ;;  %v952_v0 = vpop.f32.mrb[49].mxu1 }
 0x22f   : > { %v953_v1 = vadd.f32 %v952_v0, %v2872_v13  ;;  %v954_v4 = vpop.f32.mrb[50].mxu1  ;;  %1340 = vmatprep.mubr.bf16.mxu0 %v1076_v60  ;;  %v2965_v60 = vld [vmem:[%s3126_s6] ss:$0 sm:$0xff] }
 0x230   : > { %v955_v5 = vadd.f32 %v954_v4, %v2870_v12  ;;  %v956_v3 = vpop.f32.mrb[51].mxu1  ;;  %1341 = vmatmul.mubr.bf16.gmra.mrb[76].mxu0 %v1075_v59  ;;  %v1037_v8 = vmax.f32 %v951_v63, 0.0 }
 0x231   : > { %v957_v6 = vadd.f32 %v956_v3, %v2872_v13  ;;  %v1038_v10 = vmax.f32 %v953_v1, 0.0 }
 0x232   : > { %v1039_v9 = vmax.f32 %v955_v5, 0.0 }
 0x233   : > { %v1040_v11 = vmax.f32 %v957_v6, 0.0 }
 0x234   : > { %v1077_v14 = vpack.c.bf16 %v1039_v9, %v1037_v8 }
 0x235   : > { %v1078_v15 = vpack.c.bf16 %v1040_v11, %v1038_v10  ;;  %v960_v16 = vpop.f32.mrb[52].mxu1 }
 0x236   : > { %v961_v2 = vadd.f32 %v960_v16, %v2870_v12  ;;  %v962_v18 = vpop.f32.mrb[53].mxu1 }
 0x237   : > { %v963_v19 = vadd.f32 %v962_v18, %v2872_v13  ;;  %v964_v20 = vpop.f32.mrb[54].mxu1  ;;  %1348 = vmatprep.mubr.bf16.mxu0 %v1078_v15 }
 0x238   : > { %v965_v21 = vadd.f32 %v964_v20, %v2870_v12  ;;  %v966_v22 = vpop.f32.mrb[55].mxu1  ;;  %1349 = vmatmul.mubr.bf16.gmra.mrb[80].mxu0 %v1077_v14  ;;  %v1041_v25 = vmax.f32 %v961_v2, 0.0 }
 0x239   : > { %v967_v23 = vadd.f32 %v966_v22, %v2872_v13  ;;  %v1042_v27 = vmax.f32 %v963_v19, 0.0 }
 0x23a   : > { %v1043_v26 = vmax.f32 %v965_v21, 0.0 }
 0x23b   : > { %v1044_v28 = vmax.f32 %v967_v23, 0.0 }
 0x23c   : > { %v1079_v29 = vpack.c.bf16 %v1043_v26, %v1041_v25 }
 0x23d   : > { %v1080_v30 = vpack.c.bf16 %v1044_v28, %v1042_v27  ;;  %v970_v31 = vpop.f32.mrb[56].mxu1 }
 0x23e   : > { %v971_v32 = vadd.f32 %v970_v31, %v2870_v12  ;;  %v972_v33 = vpop.f32.mrb[57].mxu1 }
 0x23f   : > { %v973_v34 = vadd.f32 %v972_v33, %v2872_v13  ;;  %v974_v35 = vpop.f32.mrb[58].mxu1  ;;  %1356 = vmatprep.mubr.bf16.mxu0 %v1080_v30 }
 0x240   : > { %v975_v36 = vadd.f32 %v974_v35, %v2870_v12  ;;  %v976_v37 = vpop.f32.mrb[59].mxu1  ;;  %1357 = vmatmul.mubr.bf16.gmra.mrb[84].mxu0 %v1079_v29  ;;  %v1045_v39 = vmax.f32 %v971_v32, 0.0 }
 0x241   : > { %v977_v38 = vadd.f32 %v976_v37, %v2872_v13  ;;  %v1046_v41 = vmax.f32 %v973_v34, 0.0 }
 0x242   : > { %v1047_v40 = vmax.f32 %v975_v36, 0.0 }
 0x243   : > { %v1048_v42 = vmax.f32 %v977_v38, 0.0 }
 0x244   : > { %v1081_v43 = vpack.c.bf16 %v1047_v40, %v1045_v39 }
 0x245   : > { %v1082_v44 = vpack.c.bf16 %v1048_v42, %v1046_v41  ;;  %v980_v45 = vpop.f32.mrb[60].mxu1 }
 0x246   : > { %v981_v46 = vadd.f32 %v980_v45, %v2870_v12  ;;  %v982_v47 = vpop.f32.mrb[61].mxu1 }
 0x247   : > { %v983_v48 = vadd.f32 %v982_v47, %v2872_v13  ;;  %v984_v49 = vpop.f32.mrb[62].mxu1  ;;  %1364 = vmatprep.mubr.bf16.mxu0 %v1082_v44 }
 0x248   : > { %v985_v50 = vadd.f32 %v984_v49, %v2870_v12  ;;  %v986_v51 = vpop.f32.mrb[63].mxu1  ;;  %1365 = vmatmul.mubr.bf16.gmra.mrb[88].mxu0 %v1081_v43  ;;  %v1049_v53 = vmax.f32 %v981_v46, 0.0 }
 0x249   : > { %v987_v52 = vadd.f32 %v986_v51, %v2872_v13  ;;  %v1050_v55 = vmax.f32 %v983_v48, 0.0 }
 0x24a   : > { %v1051_v54 = vmax.f32 %v985_v50, 0.0 }
 0x24b   : > { %v1052_v56 = vmax.f32 %v987_v52, 0.0 }
 0x24c   : > { %v1083_v57 = vpack.c.bf16 %v1051_v54, %v1049_v53 }
 0x24d   : > { %v1084_v58 = vpack.c.bf16 %v1052_v56, %v1050_v55 }
 0x24f   : > { %1372 = vmatprep.mubr.bf16.mxu0 %v1084_v58 }
 0x250   : > { %1373 = vmatmul.mubr.bf16.gmra.mrb[92].mxu0 %v1083_v57 }
 0x2ab   : > { %v2174_v59 = vpop.f32.mrb[32].mxu0 }
 0x2ac   : > { %v2175_v61 = vpop.f32.mrb[33].mxu0 }
 0x2ad   : > { %v2176_v12 = vadd.f32 %v2175_v61, %v2174_v59  ;;  %v2177_v62 = vpop.f32.mrb[34].mxu0 }
 0x2ae   : > { %v2178_v63 = vpop.f32.mrb[35].mxu0 }
 0x2af   : > { %v1255_v13 = vadd.f32 %v2176_v12, %v2965_v60  ;;  %v2179_v0 = vadd.f32 %v2178_v63, %v2177_v62 }
 0x2b1   : > { %v1258_v1 = vadd.f32 %v2179_v0, %v2965_v60  ;;  %v1381_v4 = vmax.f32 %v1255_v13, 0.0 }
 0x2b3   : > { %v1382_v5 = vmax.f32 %v1258_v1, 0.0  ;;  %v2180_v3 = vpop.f32.mrb[36].mxu0 }
 0x2b4   : > { %v2181_v6 = vpop.f32.mrb[37].mxu0 }
 0x2b5   : > { %v2182_v7 = vadd.f32 %v2181_v6, %v2180_v3  ;;  %v2183_v8 = vpop.f32.mrb[38].mxu0  ;;  %v1413_v9 = vpack.c.bf16 %v1382_v5, %v1381_v4 }
 0x2b6   : > { %v2184_v10 = vpop.f32.mrb[39].mxu0 }
 0x2b7   : > { %v1263_v11 = vadd.f32 %v2182_v7, %v2965_v60  ;;  %v2185_v14 = vadd.f32 %v2184_v10, %v2183_v8  ;;  %2346 = vmatprep.mubr.bf16.mxu0 %v1413_v9 }
 0x2b9   : > { %v1266_v15 = vadd.f32 %v2185_v14, %v2965_v60  ;;  %v1383_v16 = vmax.f32 %v1263_v11, 0.0 }
 0x2bb   : > { %v1384_v17 = vmax.f32 %v1266_v15, 0.0  ;;  %v2186_v2 = vpop.f32.mrb[40].mxu0 }
 0x2bc   : > { %v2187_v18 = vpop.f32.mrb[41].mxu0 }
 0x2bd   : > { %v1414_v19 = vpack.c.bf16 %v1384_v17, %v1383_v16  ;;  %v2188_v20 = vadd.f32 %v2187_v18, %v2186_v2  ;;  %v2189_v21 = vpop.f32.mrb[42].mxu0 }
 0x2be   : > { %v2190_v22 = vpop.f32.mrb[43].mxu0 }
 0x2bf   : > { %v1271_v23 = vadd.f32 %v2188_v20, %v2965_v60  ;;  %v2191_v24 = vadd.f32 %v2190_v22, %v2189_v21  ;;  %2347 = vmatmul.mubr.bf16.vlgmr.msra.gmra.mrb[96].mxu0 %v1414_v19 }
 0x2c1   : > { %v1274_v25 = vadd.f32 %v2191_v24, %v2965_v60  ;;  %v1385_v26 = vmax.f32 %v1271_v23, 0.0 }
 0x2c3   : > { %v1386_v27 = vmax.f32 %v1274_v25, 0.0  ;;  %v2192_v28 = vpop.f32.mrb[44].mxu0 }
 0x2c4   : > { %v2193_v29 = vpop.f32.mrb[45].mxu0 }
 0x2c5   : > { %v2194_v30 = vadd.f32 %v2193_v29, %v2192_v28  ;;  %v2195_v31 = vpop.f32.mrb[46].mxu0  ;;  %v1415_v32 = vpack.c.bf16 %v1386_v27, %v1385_v26 }
 0x2c6   : > { %v2196_v33 = vpop.f32.mrb[47].mxu0 }
 0x2c7   : > { %v1279_v34 = vadd.f32 %v2194_v30, %v2965_v60  ;;  %v2197_v35 = vadd.f32 %v2196_v33, %v2195_v31  ;;  %2350 = vmatprep.mubr.bf16.mxu1 %v1415_v32 }
 0x2c9   : > { %v1282_v36 = vadd.f32 %v2197_v35, %v2965_v60  ;;  %v1387_v37 = vmax.f32 %v1279_v34, 0.0 }
 0x2cb   : > { %v1388_v38 = vmax.f32 %v1282_v36, 0.0  ;;  %v2198_v39 = vpop.f32.mrb[48].mxu0 }
 0x2cc   : > { %v2199_v40 = vpop.f32.mrb[49].mxu0 }
 0x2cd   : > { %v1416_v41 = vpack.c.bf16 %v1388_v38, %v1387_v37  ;;  %v2200_v42 = vadd.f32 %v2199_v40, %v2198_v39  ;;  %v2201_v43 = vpop.f32.mrb[50].mxu0 }
 0x2ce   : > { %v2202_v44 = vpop.f32.mrb[51].mxu0 }
 0x2cf   : > { %v1287_v45 = vadd.f32 %v2200_v42, %v2965_v60  ;;  %v2203_v46 = vadd.f32 %v2202_v44, %v2201_v43  ;;  %2351 = vmatmul.mubr.bf16.vlgmr.msra.gmra.mrb[64].mxu1 %v1416_v41 }
 0x2d1   : > { %v1290_v47 = vadd.f32 %v2203_v46, %v2965_v60  ;;  %v1389_v48 = vmax.f32 %v1287_v45, 0.0 }
 0x2d3   : > { %v1390_v49 = vmax.f32 %v1290_v47, 0.0  ;;  %v2204_v50 = vpop.f32.mrb[52].mxu0 }
 0x2d4   : > { %v2205_v51 = vpop.f32.mrb[53].mxu0 }
 0x2d5   : > { %v2206_v52 = vadd.f32 %v2205_v51, %v2204_v50  ;;  %v2207_v53 = vpop.f32.mrb[54].mxu0  ;;  %v1417_v54 = vpack.c.bf16 %v1390_v49, %v1389_v48 }
 0x2d6   : > { %v2208_v55 = vpop.f32.mrb[55].mxu0 }
 0x2d7   : > { %v1295_v56 = vadd.f32 %v2206_v52, %v2965_v60  ;;  %v2209_v57 = vadd.f32 %v2208_v55, %v2207_v53  ;;  %2354 = vmatprep.mubr.bf16.mxu1 %v1417_v54 }
 0x2d9   : > { %v1298_v58 = vadd.f32 %v2209_v57, %v2965_v60  ;;  %v1391_v59 = vmax.f32 %v1295_v56, 0.0 }
 0x2db   : > { %v1392_v61 = vmax.f32 %v1298_v58, 0.0  ;;  %v2210_v12 = vpop.f32.mrb[56].mxu0 }
 0x2dc   : > { %v2211_v62 = vpop.f32.mrb[57].mxu0 }
 0x2dd   : > { %v2212_v63 = vadd.f32 %v2211_v62, %v2210_v12  ;;  %v2213_v13 = vpop.f32.mrb[58].mxu0  ;;  %v1418_v0 = vpack.c.bf16 %v1392_v61, %v1391_v59 }
 0x2de   : > { %v2214_v1 = vpop.f32.mrb[59].mxu0 }
 0x2df   : > { %v1303_v4 = vadd.f32 %v2212_v63, %v2965_v60  ;;  %v2215_v5 = vadd.f32 %v2214_v1, %v2213_v13  ;;  %2355 = vmatmul.mubr.bf16.gmra.mrb[68].mxu1 %v1418_v0 }
 0x2e1   : > { %v1306_v3 = vadd.f32 %v2215_v5, %v2965_v60  ;;  %v1393_v6 = vmax.f32 %v1303_v4, 0.0 }
 0x2e3   : > { %v1394_v7 = vmax.f32 %v1306_v3, 0.0  ;;  %v2216_v8 = vpop.f32.mrb[60].mxu0 }
 0x2e4   : > { %v2217_v9 = vpop.f32.mrb[61].mxu0 }
 0x2e5   : > { %v2218_v10 = vadd.f32 %v2217_v9, %v2216_v8  ;;  %v2219_v11 = vpop.f32.mrb[62].mxu0  ;;  %v1419_v14 = vpack.c.bf16 %v1394_v7, %v1393_v6 }
 0x2e6   : > { %v2220_v15 = vpop.f32.mrb[63].mxu0 }
 0x2e7   : > { %v1311_v16 = vadd.f32 %v2218_v10, %v2965_v60  ;;  %v2221_v17 = vadd.f32 %v2220_v15, %v2219_v11  ;;  %2358 = vmatprep.mubr.bf16.mxu1 %v1419_v14 }
 0x2e9   : > { %v1314_v2 = vadd.f32 %v2221_v17, %v2965_v60  ;;  %v1395_v18 = vmax.f32 %v1311_v16, 0.0 }
 0x2eb   : > { %v1396_v19 = vmax.f32 %v1314_v2, 0.0  ;;  %v2222_v20 = vpop.f32.mrb[64].mxu0 }
 0x2ec   : > { %v2223_v21 = vpop.f32.mrb[65].mxu0 }
 0x2ed   : > { %v2224_v22 = vadd.f32 %v2223_v21, %v2222_v20  ;;  %v2225_v23 = vpop.f32.mrb[66].mxu0  ;;  %v1420_v24 = vpack.c.bf16 %v1396_v19, %v1395_v18 }
 0x2ee   : > { %v2226_v25 = vpop.f32.mrb[67].mxu0 }
 0x2ef   : > { %v1319_v26 = vadd.f32 %v2224_v22, %v2965_v60  ;;  %v2227_v27 = vadd.f32 %v2226_v25, %v2225_v23  ;;  %2359 = vmatmul.mubr.bf16.gmra.mrb[72].mxu1 %v1420_v24 }
 0x2f1   : > { %v1322_v28 = vadd.f32 %v2227_v27, %v2965_v60  ;;  %v1397_v29 = vmax.f32 %v1319_v26, 0.0 }
 0x2f3   : > { %v1398_v30 = vmax.f32 %v1322_v28, 0.0  ;;  %v2228_v31 = vpop.f32.mrb[68].mxu0 }
 0x2f4   : > { %v2229_v32 = vpop.f32.mrb[69].mxu0 }
 0x2f5   : > { %v2230_v33 = vadd.f32 %v2229_v32, %v2228_v31  ;;  %v2231_v34 = vpop.f32.mrb[70].mxu0  ;;  %v1421_v35 = vpack.c.bf16 %v1398_v30, %v1397_v29 }
 0x2f6   : > { %v2232_v36 = vpop.f32.mrb[71].mxu0 }
 0x2f7   : > { %v1327_v37 = vadd.f32 %v2230_v33, %v2965_v60  ;;  %v2233_v38 = vadd.f32 %v2232_v36, %v2231_v34  ;;  %2362 = vmatprep.mubr.bf16.mxu1 %v1421_v35 }
 0x2f9   : > { %v1330_v39 = vadd.f32 %v2233_v38, %v2965_v60  ;;  %v1399_v40 = vmax.f32 %v1327_v37, 0.0 }
 0x2fb   : > { %v1400_v41 = vmax.f32 %v1330_v39, 0.0  ;;  %v2234_v42 = vpop.f32.mrb[72].mxu0 }
 0x2fc   : > { %v2235_v43 = vpop.f32.mrb[73].mxu0 }
 0x2fd   : > { %v2236_v44 = vadd.f32 %v2235_v43, %v2234_v42  ;;  %v2237_v45 = vpop.f32.mrb[74].mxu0  ;;  %v1422_v46 = vpack.c.bf16 %v1400_v41, %v1399_v40 }
 0x2fe   : > { %v2238_v47 = vpop.f32.mrb[75].mxu0 }
 0x2ff   : > { %v1335_v48 = vadd.f32 %v2236_v44, %v2965_v60  ;;  %v2239_v49 = vadd.f32 %v2238_v47, %v2237_v45  ;;  %2363 = vmatmul.mubr.bf16.gmra.mrb[76].mxu1 %v1422_v46  ;;  %v3003_v47 = vld [vmem:[%s3128_s8] ss:$0 sm:$0xff] }
 0x301   : > { %v1338_v50 = vadd.f32 %v2239_v49, %v2965_v60  ;;  %v1401_v51 = vmax.f32 %v1335_v48, 0.0 }
 0x303   : > { %v1402_v52 = vmax.f32 %v1338_v50, 0.0  ;;  %v2240_v53 = vpop.f32.mrb[76].mxu0 }
 0x304   : > { %v2241_v54 = vpop.f32.mrb[77].mxu0 }
 0x305   : > { %v2242_v55 = vadd.f32 %v2241_v54, %v2240_v53  ;;  %v2243_v56 = vpop.f32.mrb[78].mxu0  ;;  %v1423_v57 = vpack.c.bf16 %v1402_v52, %v1401_v51 }
 0x306   : > { %v2244_v58 = vpop.f32.mrb[79].mxu0 }
 0x307   : > { %v1343_v59 = vadd.f32 %v2242_v55, %v2965_v60  ;;  %v2245_v61 = vadd.f32 %v2244_v58, %v2243_v56  ;;  %2366 = vmatprep.mubr.bf16.mxu1 %v1423_v57 }
 0x309   : > { %v1346_v12 = vadd.f32 %v2245_v61, %v2965_v60  ;;  %v1403_v62 = vmax.f32 %v1343_v59, 0.0 }
 0x30b   : > { %v1404_v63 = vmax.f32 %v1346_v12, 0.0  ;;  %v2246_v13 = vpop.f32.mrb[80].mxu0 }
 0x30c   : > { %v2247_v0 = vpop.f32.mrb[81].mxu0 }
 0x30d   : > { %v2248_v1 = vadd.f32 %v2247_v0, %v2246_v13  ;;  %v2249_v4 = vpop.f32.mrb[82].mxu0  ;;  %v1424_v5 = vpack.c.bf16 %v1404_v63, %v1403_v62 }
 0x30e   : > { %v2250_v3 = vpop.f32.mrb[83].mxu0 }
 0x30f   : > { %v1351_v6 = vadd.f32 %v2248_v1, %v2965_v60  ;;  %v2251_v7 = vadd.f32 %v2250_v3, %v2249_v4  ;;  %2367 = vmatmul.mubr.bf16.gmra.mrb[80].mxu1 %v1424_v5 }
 0x311   : > { %v1354_v8 = vadd.f32 %v2251_v7, %v2965_v60  ;;  %v1405_v9 = vmax.f32 %v1351_v6, 0.0 }
 0x313   : > { %v1406_v10 = vmax.f32 %v1354_v8, 0.0  ;;  %v2252_v11 = vpop.f32.mrb[84].mxu0 }
 0x314   : > { %v2253_v14 = vpop.f32.mrb[85].mxu0 }
 0x315   : > { %v2254_v15 = vadd.f32 %v2253_v14, %v2252_v11  ;;  %v2255_v16 = vpop.f32.mrb[86].mxu0  ;;  %v1425_v17 = vpack.c.bf16 %v1406_v10, %v1405_v9 }
 0x316   : > { %v2256_v2 = vpop.f32.mrb[87].mxu0 }
 0x317   : > { %v1359_v18 = vadd.f32 %v2254_v15, %v2965_v60  ;;  %v2257_v19 = vadd.f32 %v2256_v2, %v2255_v16  ;;  %2370 = vmatprep.mubr.bf16.mxu1 %v1425_v17 }
 0x319   : > { %v1362_v20 = vadd.f32 %v2257_v19, %v2965_v60  ;;  %v1407_v21 = vmax.f32 %v1359_v18, 0.0 }
 0x31b   : > { %v1408_v22 = vmax.f32 %v1362_v20, 0.0  ;;  %v2258_v23 = vpop.f32.mrb[88].mxu0 }
 0x31c   : > { %v2259_v24 = vpop.f32.mrb[89].mxu0 }
 0x31d   : > { %v2260_v25 = vadd.f32 %v2259_v24, %v2258_v23  ;;  %v2261_v26 = vpop.f32.mrb[90].mxu0  ;;  %v1426_v27 = vpack.c.bf16 %v1408_v22, %v1407_v21 }
 0x31e   : > { %v2262_v28 = vpop.f32.mrb[91].mxu0 }
 0x31f   : > { %v1367_v29 = vadd.f32 %v2260_v25, %v2965_v60  ;;  %v2263_v30 = vadd.f32 %v2262_v28, %v2261_v26  ;;  %2371 = vmatmul.mubr.bf16.gmra.mrb[84].mxu1 %v1426_v27 }
 0x321   : > { %v1370_v31 = vadd.f32 %v2263_v30, %v2965_v60  ;;  %v1409_v32 = vmax.f32 %v1367_v29, 0.0 }
 0x323   : > { %v1410_v33 = vmax.f32 %v1370_v31, 0.0  ;;  %v2264_v34 = vpop.f32.mrb[92].mxu0 }
 0x324   : > { %v2265_v35 = vpop.f32.mrb[93].mxu0 }
 0x325   : > { %v2266_v36 = vadd.f32 %v2265_v35, %v2264_v34  ;;  %v2267_v37 = vpop.f32.mrb[94].mxu0  ;;  %v1427_v38 = vpack.c.bf16 %v1410_v33, %v1409_v32 }
 0x326   : > { %v2268_v39 = vpop.f32.mrb[95].mxu0 }
 0x327   : > { %v1375_v40 = vadd.f32 %v2266_v36, %v2965_v60  ;;  %v2269_v41 = vadd.f32 %v2268_v39, %v2267_v37  ;;  %2374 = vmatprep.mubr.bf16.mxu1 %v1427_v38 }
 0x329   : > { %v1378_v42 = vadd.f32 %v2269_v41, %v2965_v60  ;;  %v1411_v43 = vmax.f32 %v1375_v40, 0.0 }
 0x32b   : > { %v1412_v44 = vmax.f32 %v1378_v42, 0.0 }
 0x32d   : > { %v1428_v45 = vpack.c.bf16 %v1412_v44, %v1411_v43 }
 0x32f   : > { %2375 = vmatmul.mubr.bf16.gmra.mrb[88].mxu1 %v1428_v45 }
 0x392   : > { %v2348_v46 = vpop.f32.mrb[96].mxu0 }
 0x393   : > { %v1534_v48 = vpop.f32.mrb[97].mxu0  ;;  %v1543_v50 = vadd.f32 %v2348_v46, %v3003_v47 }
 0x394   : > { %v2349_v49 = vpop.f32.mrb[98].mxu0  ;;  %v1535_v60 = vadd.f32 %v3003_v47, %v1534_v48 }
 0x395   : > { %v1546_v51 = vadd.f32 %v2349_v49, %v3003_v47  ;;  %v1537_v52 = vpop.f32.mrb[99].mxu0 }
 0x396   : > { %v1538_v53 = vadd.f32 %v3003_v47, %v1537_v52 }
 0x397   : > { %v2053_v54 = vpack.c.bf16 %v1546_v51, %v1543_v50 }
 0x398   : > { %v2048_v55 = vpack.c.bf16 %v1538_v53, %v1535_v60 }
 0x399   : > { %2125 = vst [vmem:[%s3011_s22 + $0x8] sm:$0xff] %v2053_v54  }
 0x39a   : > { %2049 = vst [vmem:[%s3011_s22] sm:$0xff] %v2048_v55  }
 0x3a2   : > { %v2352_v56 = vpop.f32.mrb[64].mxu1 }
 0x3a3   : > { %v1550_v57 = vpop.f32.mrb[65].mxu1  ;;  %v1559_v59 = vadd.f32 %v2352_v56, %v3003_v47 }
 0x3a4   : > { %v2353_v58 = vpop.f32.mrb[66].mxu1  ;;  %v1551_v62 = vadd.f32 %v3003_v47, %v1550_v57 }
 0x3a5   : > { %v1562_v61 = vadd.f32 %v2353_v58, %v3003_v47  ;;  %v1553_v12 = vpop.f32.mrb[67].mxu1 }
 0x3a6   : > { %v1554_v63 = vadd.f32 %v3003_v47, %v1553_v12 }
 0x3a7   : > { %v2063_v13 = vpack.c.bf16 %v1562_v61, %v1559_v59 }
 0x3a8   : > { %v2058_v0 = vpack.c.bf16 %v1554_v63, %v1551_v62 }
 0x3a9   : > { %2127 = vst [vmem:[%s3011_s22 + $0x18] sm:$0xff] %v2063_v13  }
 0x3aa   : > { %2126 = vst [vmem:[%s3011_s22 + $0x10] sm:$0xff] %v2058_v0  }
 0x3b2   : > { %v2356_v1 = vpop.f32.mrb[68].mxu1 }
 0x3b3   : > { %v1566_v4 = vpop.f32.mrb[69].mxu1  ;;  %v1575_v3 = vadd.f32 %v2356_v1, %v3003_v47 }
 0x3b4   : > { %v2357_v5 = vpop.f32.mrb[70].mxu1  ;;  %v1567_v8 = vadd.f32 %v3003_v47, %v1566_v4 }
 0x3b5   : > { %v1578_v6 = vadd.f32 %v2357_v5, %v3003_v47  ;;  %v1569_v7 = vpop.f32.mrb[71].mxu1 }
 0x3b6   : > { %v1570_v9 = vadd.f32 %v3003_v47, %v1569_v7 }
 0x3b7   : > { %v2073_v10 = vpack.c.bf16 %v1578_v6, %v1575_v3 }
 0x3b8   : > { %v2068_v11 = vpack.c.bf16 %v1570_v9, %v1567_v8 }
 0x3b9   : > { %2129 = vst [vmem:[%s3011_s22 + $0x28] sm:$0xff] %v2073_v10  }
 0x3ba   : > { %2128 = vst [vmem:[%s3011_s22 + $0x20] sm:$0xff] %v2068_v11  }
 0x3c2   : > { %v2360_v14 = vpop.f32.mrb[72].mxu1 }
 0x3c3   : > { %v1582_v15 = vpop.f32.mrb[73].mxu1  ;;  %v1591_v17 = vadd.f32 %v2360_v14, %v3003_v47 }
 0x3c4   : > { %v2361_v16 = vpop.f32.mrb[74].mxu1  ;;  %v1583_v19 = vadd.f32 %v3003_v47, %v1582_v15 }
 0x3c5   : > { %v1594_v2 = vadd.f32 %v2361_v16, %v3003_v47  ;;  %v1585_v18 = vpop.f32.mrb[75].mxu1 }
 0x3c6   : > { %v1586_v20 = vadd.f32 %v3003_v47, %v1585_v18 }
 0x3c7   : > { %v2083_v21 = vpack.c.bf16 %v1594_v2, %v1591_v17 }
 0x3c8   : > { %v2078_v22 = vpack.c.bf16 %v1586_v20, %v1583_v19 }
 0x3c9   : > { %2131 = vst [vmem:[%s3011_s22 + $0x38] sm:$0xff] %v2083_v21  }
 0x3ca   : > { %2130 = vst [vmem:[%s3011_s22 + $0x30] sm:$0xff] %v2078_v22  }
 0x3d2   : > { %v2364_v23 = vpop.f32.mrb[76].mxu1 }
 0x3d3   : > { %v1598_v24 = vpop.f32.mrb[77].mxu1  ;;  %v1607_v26 = vadd.f32 %v2364_v23, %v3003_v47 }
 0x3d4   : > { %v2365_v25 = vpop.f32.mrb[78].mxu1  ;;  %v1599_v29 = vadd.f32 %v3003_v47, %v1598_v24 }
 0x3d5   : > { %v1610_v27 = vadd.f32 %v2365_v25, %v3003_v47  ;;  %v1601_v28 = vpop.f32.mrb[79].mxu1 }
 0x3d6   : > { %v1602_v30 = vadd.f32 %v3003_v47, %v1601_v28 }
 0x3d7   : > { %v2093_v31 = vpack.c.bf16 %v1610_v27, %v1607_v26 }
 0x3d8   : > { %v2088_v32 = vpack.c.bf16 %v1602_v30, %v1599_v29 }
 0x3d9   : > { %2133 = vst [vmem:[%s3011_s22 + $0x48] sm:$0xff] %v2093_v31  }
 0x3da   : > { %2132 = vst [vmem:[%s3011_s22 + $0x40] sm:$0xff] %v2088_v32  }
 0x3e2   : > { %v2368_v33 = vpop.f32.mrb[80].mxu1 }
 0x3e3   : > { %v1614_v34 = vpop.f32.mrb[81].mxu1  ;;  %v1623_v36 = vadd.f32 %v2368_v33, %v3003_v47 }
 0x3e4   : > { %v2369_v35 = vpop.f32.mrb[82].mxu1  ;;  %v1615_v39 = vadd.f32 %v3003_v47, %v1614_v34 }
 0x3e5   : > { %v1626_v37 = vadd.f32 %v2369_v35, %v3003_v47  ;;  %v1617_v38 = vpop.f32.mrb[83].mxu1 }
 0x3e6   : > { %v1618_v40 = vadd.f32 %v3003_v47, %v1617_v38 }
 0x3e7   : > { %v2103_v41 = vpack.c.bf16 %v1626_v37, %v1623_v36 }
 0x3e8   : > { %v2098_v42 = vpack.c.bf16 %v1618_v40, %v1615_v39 }
 0x3e9   : > { %2135 = vst [vmem:[%s3011_s22 + $0x58] sm:$0xff] %v2103_v41  }
 0x3ea   : > { %2134 = vst [vmem:[%s3011_s22 + $0x50] sm:$0xff] %v2098_v42  }
 0x3f2   : > { %v2372_v43 = vpop.f32.mrb[84].mxu1 }
 0x3f3   : > { %v1630_v44 = vpop.f32.mrb[85].mxu1  ;;  %v1639_v46 = vadd.f32 %v2372_v43, %v3003_v47 }
 0x3f4   : > { %v2373_v45 = vpop.f32.mrb[86].mxu1  ;;  %v1631_v50 = vadd.f32 %v3003_v47, %v1630_v44 }
 0x3f5   : > { %v1642_v48 = vadd.f32 %v2373_v45, %v3003_v47  ;;  %v1633_v49 = vpop.f32.mrb[87].mxu1 }
 0x3f6   : > { %v1634_v51 = vadd.f32 %v3003_v47, %v1633_v49 }
 0x3f7   : > { %v2113_v52 = vpack.c.bf16 %v1642_v48, %v1639_v46 }
 0x3f8   : > { %v2108_v60 = vpack.c.bf16 %v1634_v51, %v1631_v50 }
 0x3f9   : > { %2137 = vst [vmem:[%s3011_s22 + $0x68] sm:$0xff] %v2113_v52  }
 0x3fa   : > { %2136 = vst [vmem:[%s3011_s22 + $0x60] sm:$0xff] %v2108_v60  }
 0x402   : > { %v2376_v53 = vpop.f32.mrb[88].mxu1 }
 0x403   : > { %v1646_v54 = vpop.f32.mrb[89].mxu1  ;;  %v1655_v56 = vadd.f32 %v2376_v53, %v3003_v47 }
 0x404   : > { %v2377_v55 = vpop.f32.mrb[90].mxu1  ;;  %v1647_v59 = vadd.f32 %v3003_v47, %v1646_v54  ;;  %1828 = sbr.rel (!%p2641_p5) target bundleno = 1063 (0x427), region = 60 }
 0x405   : > { %v1658_v57 = vadd.f32 %v2377_v55, %v3003_v47  ;;  %v1649_v58 = vpop.f32.mrb[91].mxu1 }
 0x406   : > { %v1650_v61 = vadd.f32 %v3003_v47, %v1649_v58 }
 0x407   : > { %v2123_v12 = vpack.c.bf16 %v1658_v57, %v1655_v56 }
 0x408   : > { %v2118_v62 = vpack.c.bf16 %v1650_v61, %v1647_v59 }
 0x409   : > { %2139 = vst [vmem:[%s3011_s22 + $0x78] sm:$0xff] %v2123_v12  }
 0x40a   : > { %2138 = vst [vmem:[%s3011_s22 + $0x70] sm:$0xff] %v2118_v62  }
 0x40b   : > { %s3137_s25 = smov (!%p1831_p11, %s1830_s25), 32 }
 0x40c   : > { %s3064_s26 = sshll.u32 %s3137_s25, 6 }
 0x40d   : > { %s1835_s29 = ssub.s32 2048, %s3064_s26 }
 0x40e   : > { %1836 = vsyncadd %s3059_s24, %s1835_s29  ;;  %p2006_p12 = scmp.ne.s32.totalorder %s3064_s26, 0  ;;  %s2044_s14 = sshll.u32 %s2624_s13, 11 }
 0x40f   : > { %s3073_s16 = scalar_lea.hbm %s3129_s9, %s2044_s14  ;;  %s1841_s23 = sshll.u32 %s3011_s22, 4  ;;  %s3076_s23 = int_to_ptr.vmem [resolvable:$true] %s1841_s23 }
 0x410   : > { %s2485_s27 = scalar_lea.vmem %s3076_s23, %s3064_s26  ;;  %s2550_s17 = smov [#allocation2]  }
 0x411   : > { %p2486_p13 = scmp.ne.s32.totalorder %s3076_s23, %s2485_s27  ;;  %s2489_s21 = sshll.u32 %s2550_s17, 4  ;;  %s2490_s21 = int_to_ptr.vmem [resolvable:$false] %s2489_s21 }
 0x412   : > { %s2491_s13 = scalar_lea.vmem %s2490_s21, 4096  ;;  %p2492_p2 = scmp.lt.s32.totalorder %s3076_s23, %s2490_s21 }
 0x413   : > { %p2487_p0 = pnand %p2486_p13, %p2006_p12  ;;  %p2493_p3 = scmp.lt.s32.totalorder %s2491_s13, %s2485_s27 }
 0x415   : > { %p2488_p1 = pneg %p2487_p0  ;;  %p2494_p4 = por %p2493_p3, %p2492_p2 }
 0x417   : > { %p2495_p5 = pnand %p2494_p4, %p2488_p1 }
 0x419   : > { %2498 = shalt.err (!%p2495_p5)
}
 0x41a   : > { %s2499_s22 = scalar_lea.hbm %s3073_s16, %s3064_s26  ;;  %s2503_s14 = scalar_lea.hbm %s3129_s9, 4032 }
 0x41b   : > { %p2500_p7 = scmp.ne.s32.totalorder %s3073_s16, %s2499_s22  ;;  %p2504_p10 = scmp.lt.u32.totalorder %s3073_s16, %s3129_s9 }
 0x41c   : > { %p2505_p11 = scmp.lt.u32.totalorder %s2503_s14, %s2499_s22  ;;  %p2507_p0 = scmp.lt.u32.totalorder %s2499_s22, %s3073_s16 }
 0x41d   : > { %p2501_p8 = pnand %p2500_p7, %p2006_p12 }
 0x41e   : > { %p2506_p13 = por %p2505_p11, %p2504_p10 }
 0x41f   : > { %p2502_p9 = pneg %p2501_p8 }
 0x420   : > { %p2508_p1 = por %p2507_p0, %p2506_p13 }
 0x422   : > { %p2509_p2 = pnand %p2508_p1, %p2502_p9 }
 0x424   : > { %2512 = shalt.err (!%p2509_p2)
}
 0x425   : > { %s2551_s27 = smov 64   ;;  %s2552_s17 = smov 4  }
 0x426   : > { %1847 = dma.vmem_to_hbm [thread:$0]  (%p2006_p12), %s3076_s23, %s3064_s26, %s3073_s16, %s3059_s24, %s2551_s27, %s2551_s27, %s2552_s17  }
 0x427 PF: > { %p2399_p3 = scmp.ge.s32.totalorder %s2547_s12, 2  ;;  %s1856_s21 = sand.u32 1, %s2535_s30  }
 0x428   : > { %s1857_s13 = scalar_lea.sflag [#allocation3], %s1856_s21 }
 0x429   : > { %p2396_p4 = pnand %p2399_p3, %p2645_p6 }
 0x42b   : > { %2530 = dma.done.wait (!%p2396_p4), %s1857_s13, 2048  }
 0x42c   : > { %2532 = vsyncadd (!%p2396_p4), %s1857_s13, 4294965248  ;;  %p19_p5 = scmp.ge.s32.totalorder %s2628_s15, 4   ;;  %s3132_s30 = smov %s2539_s10 }
 0x42d   : > { %s3133_s10 = smov %s2543_s11  ;;  %s3134_s11 = smov %s2639_s18 }
 0x42e   : > { %s3135_s12 = smov %s2628_s15  ;;  %21 = sbr.rel (!%p19_p5) target bundleno = 3 (0x3), region = 91 }
 0x435   :  { %1862 = vsyncpa [#allocation3], 1 }
 0x436   :  { %1864 = vsyncpa [#allocation3 + $0x1], 1 }

</bundles_post_ra>
